<compile_context>
chip_gen: v7x
topology: tpu7x:2x2x1
jax: 0.10.0
libtpu: 0.0.40
codegen_flags: <defaults>
</compile_context>

<pallas_src>
import jax
import jax.numpy as jnp
from jax import lax
from jax.experimental import pallas as pl
from jax.experimental.pallas import tpu as pltpu

LN_EPS = 1e-5
LEAKY_SLOPE = 0.01


def _layernorm(h, gamma, beta):
    # Single-pass statistics: mean and mean-of-squares together, var = E[h^2] - mu^2.
    # h, gamma, beta are f32; biased variance + eps=1e-5 matches nn.LayerNorm.
    mu = jnp.mean(h, axis=-1, keepdims=True)
    ms = jnp.mean(h * h, axis=-1, keepdims=True)
    var = jnp.maximum(ms - mu * mu, 0.0)   # guard tiny negative from cancellation
    return (h - mu) * lax.rsqrt(var + LN_EPS) * gamma + beta


def residual_block_kernel(x_ref, w1_ref, w2_ref, vecs_ref, o_ref):
    mxu_dtype = w1_ref.dtype                       # bf16 MXU operands
    x = x_ref[...]
    x_f32 = x.astype(jnp.float32)                  # residual kept in f32

    v = vecs_ref[...]                              # packed (8, D) f32
    b1, g1, be1 = v[0:1, :], v[1:2, :], v[2:3, :]
    b2, g2, be2 = v[3:4, :], v[4:5, :], v[5:6, :]

    # Linear 1 (bf16 MXU, f32 accumulate) + bias
    h = jnp.dot(x.astype(mxu_dtype), w1_ref[...],
                preferred_element_type=jnp.float32) + b1
    # LayerNorm 1 (f32 on the VPU/XLU/EUP)
    h = _layernorm(h, g1, be1)
    # LeakyReLU
    h = jnp.where(h > 0, h, LEAKY_SLOPE * h)
    # Linear 2 (bf16 MXU, f32 accumulate) + bias
    h = jnp.dot(h.astype(mxu_dtype), w2_ref[...],
                preferred_element_type=jnp.float32) + b2
    # LayerNorm 2
    h = _layernorm(h, g2, be2)

    # Residual add in f32, cast once on store (bf16 output -> halves the HBM out stream).
    o_ref[...] = (x_f32 + h).astype(o_ref.dtype)


def _choose_tiling(B):
    """Return (B_padded, tb): tb divides B_padded, grid = B_padded // tb is deep
    enough (>=4-8 steps) to let BlockSpec double-buffering hide the HBM stream,
    while keeping tb large (~256 rows) to amortize per-step overhead."""
    if B <= 512:
        return B, B            # single tile; block == full array satisfies (8,128) rule
    candidates = [t for t in (512, 448, 384, 320, 256, 192, 128, 64, 32, 16, 8)
                  if B % t == 0]
    if candidates:
        for min_steps, min_tb in ((8, 256), (4, 256), (8, 8), (4, 8), (2, 8), (1, 8)):
            ok = [t for t in candidates if (B // t) >= min_steps and t >= min_tb]
            if ok:
                return B, max(ok)
    # No clean divisor (e.g. B=10000): pad the batch up to a multiple of 256.
    tb = 256
    return ((B + tb - 1) // tb) * tb, tb


def _vmem_capacity_bytes():
    try:
        return int(pltpu.get_tpu_info().vmem_capacity_bytes)
    except Exception:
        return 64 * 1024 * 1024   # conservative: v7x per-TensorCore VMEM


def _vmem_limit_bytes(tb, D, w_itemsize, in_itemsize, out_itemsize):
    weights = 2 * (2 * D * D * w_itemsize)            # two weight mats, double-buffered
    vecs = 2 * (8 * D * 4)                            # packed vector block, double-buffered
    io = 2 * tb * D * (in_itemsize + out_itemsize)    # in + out tiles, double-buffered
    scratch = 4 * tb * D * 4                          # f32 intermediates headroom
    need = weights + vecs + io + scratch
    cap = _vmem_capacity_bytes()
    # Floor at 32 MiB so the compiler keeps its usual scratch; cap with ~12.5% headroom
    # below the physical VMEM of the current chip (so v6e/v5e can use >64 MiB, v7x <=56 MiB).
    return int(min(max(need, 32 * 1024 * 1024), int(cap * 0.875)))


def residual_block(x, params, *, tb=None, out_dtype=None, core_parallel=False):
    """x: (B, D) float (bf16 recommended for HBM bandwidth).
    params: dict with w1, w2 pre-transposed (D_in, D_out) bf16 and vecs = packed
    (8, D) f32 rows [b1, g1, be1, b2, g2, be2, 0, 0]."""
    B, D = x.shape
    if tb is None:
        B_pad, tb = _choose_tiling(B)
    else:
        tb = (max(8, min(tb, B)) if B >= 8 else B)
        B_pad = ((B + tb - 1) // tb) * tb
    if B_pad != B:
        x = jnp.pad(x, ((0, B_pad - B), (0, 0)))
    out_dtype = x.dtype if out_dtype is None else jnp.dtype(out_dtype)
    grid = (B_pad // tb,)

    row_spec = pl.BlockSpec((tb, D), lambda i: (i, 0))   # tiled over batch
    # Constant index_map -> weights/vectors are fetched once and stay VMEM-resident.
    mat_spec = pl.BlockSpec((D, D), lambda i: (0, 0))
    vec_spec = pl.BlockSpec((8, D), lambda i: (0, 0))

    # CORE_PARALLEL shards the batch axis across v7x's two TensorCores; plain
    # "parallel" is the portable default (near-zero codegen impact but always valid).
    dim_sem = (pltpu.CORE_PARALLEL,) if core_parallel else ("parallel",)

    out = pl.pallas_call(
        residual_block_kernel,
        out_shape=jax.ShapeDtypeStruct((B_pad, D), out_dtype),
        grid_spec=pl.GridSpec(
            grid=grid,
            in_specs=[row_spec, mat_spec, mat_spec, vec_spec],
            out_specs=row_spec,
        ),
        compiler_params=pltpu.CompilerParams(
            dimension_semantics=dim_sem,
            vmem_limit_bytes=_vmem_limit_bytes(
                tb, D,
                params["w1"].dtype.itemsize,
                x.dtype.itemsize,
                out_dtype.itemsize,
            ),
        ),
    )(x, params["w1"], params["w2"], params["vecs"])

    return out[:B] if B_pad != B else out


def init_params(key, dim):
    """Synthetic init matching nn.Linear / nn.LayerNorm shapes.
    Weights stored bf16 and pre-transposed to (in, out); the six (1, dim) vectors
    (b1, g1, be1, b2, g2, be2) are packed into one (8, dim) f32 array."""
    k1, k2, k3, k4 = jax.random.split(key, 4)
    bound = 1.0 / jnp.sqrt(dim)
    w1 = jax.random.uniform(k1, (dim, dim), jnp.float32, -bound, bound).astype(jnp.bfloat16)
    w2 = jax.random.uniform(k3, (dim, dim), jnp.float32, -bound, bound).astype(jnp.bfloat16)
    b1 = jax.random.uniform(k2, (dim,), jnp.float32, -bound, bound)
    b2 = jax.random.uniform(k4, (dim,), jnp.float32, -bound, bound)
    g1 = jnp.ones((dim,), jnp.float32)
    be1 = jnp.zeros((dim,), jnp.float32)
    g2 = jnp.ones((dim,), jnp.float32)
    be2 = jnp.zeros((dim,), jnp.float32)
    vecs = jnp.stack([b1, g1, be1, b2, g2, be2,
                      jnp.zeros((dim,), jnp.float32),
                      jnp.zeros((dim,), jnp.float32)], axis=0)   # (8, dim)
    return dict(w1=w1, w2=w2, vecs=vecs)


def residual_block_ref(x, p):
    """Pure-JAX reference with the same bf16-operand / f32-accumulate casting."""
    cdt = p["w1"].dtype
    v = p["vecs"]
    b1, g1, be1, b2, g2, be2 = v[0], v[1], v[2], v[3], v[4], v[5]
    xf = x.astype(jnp.float32)
    h = jnp.dot(x.astype(cdt), p["w1"], preferred_element_type=jnp.float32) + b1
    mu = h.mean(-1, keepdims=True)
    var = ((h - mu) ** 2).mean(-1, keepdims=True)
    h = (h - mu) * lax.rsqrt(var + LN_EPS) * g1 + be1
    h = jnp.where(h > 0, h, LEAKY_SLOPE * h)
    h = jnp.dot(h.astype(cdt), p["w2"], preferred_element_type=jnp.float32) + b2
    mu = h.mean(-1, keepdims=True)
    var = ((h - mu) ** 2).mean(-1, keepdims=True)
    h = (h - mu) * lax.rsqrt(var + LN_EPS) * g2 + be2
    return xf + h


if __name__ == "__main__":
    key = jax.random.PRNGKey(0)
    kx, kp = jax.random.split(key)

    # Lane-dense, MXU-aligned demo: hidden dim D=128, batch B=2048.
    # _choose_tiling picks tb=256 -> an 8-step grid so the x/out DMA stream is
    # pipelined behind compute (and each v7x core would get >=4 steps).
    B, D = 2048, 128
    x = jax.random.normal(kx, (B, D), jnp.float32).astype(jnp.bfloat16)  # bf16 I/O
    params = init_params(kp, D)

    out = residual_block(x, params)            # bf16 in -> bf16 out
    out = jax.block_until_ready(out)

    ref = residual_block_ref(x, params)
    assert out.shape == (B, D)
    assert out.dtype == jnp.bfloat16
    assert jnp.allclose(out.astype(jnp.float32), ref, atol=6e-2, rtol=6e-2), \
        "mismatch vs reference"

    print("KERNEL_OK")
</pallas_src>

<mosaic_0001>
module attributes {stable_mosaic.version = 11 : i64} {
  func.func @residual_block_kernel(%arg0: i32, %arg1: memref<256x128xbf16, #tpu.memory_space<vmem>>, %arg2: memref<128x128xbf16, #tpu.memory_space<vmem>>, %arg3: memref<128x128xbf16, #tpu.memory_space<vmem>>, %arg4: memref<8x128xf32, #tpu.memory_space<vmem>>, %arg5: memref<256x128xbf16, #tpu.memory_space<vmem>>) attributes {dimension_semantics = [#tpu.dimension_semantics<parallel>], iteration_bounds = array<i64: 8>, scalar_prefetch = 0 : i64, scratch_operands = 0 : i64, tpu.core_type = #tpu.core_type<tc>, window_params = [{transform_indices = @transform_0, window_bounds = array<i64: 256, 128>}, {pipeline_mode = #tpu.pipeline_mode<synchronous>, transform_indices = @transform_1, window_bounds = array<i64: 128, 128>}, {pipeline_mode = #tpu.pipeline_mode<synchronous>, transform_indices = @transform_2, window_bounds = array<i64: 128, 128>}, {pipeline_mode = #tpu.pipeline_mode<synchronous>, transform_indices = @transform_3, window_bounds = array<i64: 8, 128>}, {transform_indices = @transform_4, window_bounds = array<i64: 256, 128>}]} {
    %c0 = arith.constant 0 : index
    %c0_0 = arith.constant 0 : index
    %0 = vector.load %arg1[%c0, %c0_0] : memref<256x128xbf16, #tpu.memory_space<vmem>>, vector<256x128xbf16>
    %1 = arith.extf %0 : vector<256x128xbf16> to vector<256x128xf32>
    %c0_1 = arith.constant 0 : index
    %c0_2 = arith.constant 0 : index
    %2 = vector.load %arg4[%c0_1, %c0_2] : memref<8x128xf32, #tpu.memory_space<vmem>>, vector<8x128xf32>
    %3 = vector.extract_strided_slice %2 {offsets = [0, 0], sizes = [1, 128], strides = [1, 1]} : vector<8x128xf32> to vector<1x128xf32>
    %4 = vector.extract_strided_slice %2 {offsets = [1, 0], sizes = [1, 128], strides = [1, 1]} : vector<8x128xf32> to vector<1x128xf32>
    %5 = vector.extract_strided_slice %2 {offsets = [2, 0], sizes = [1, 128], strides = [1, 1]} : vector<8x128xf32> to vector<1x128xf32>
    %6 = vector.extract_strided_slice %2 {offsets = [3, 0], sizes = [1, 128], strides = [1, 1]} : vector<8x128xf32> to vector<1x128xf32>
    %7 = vector.extract_strided_slice %2 {offsets = [4, 0], sizes = [1, 128], strides = [1, 1]} : vector<8x128xf32> to vector<1x128xf32>
    %8 = vector.extract_strided_slice %2 {offsets = [5, 0], sizes = [1, 128], strides = [1, 1]} : vector<8x128xf32> to vector<1x128xf32>
    %c0_3 = arith.constant 0 : index
    %c0_4 = arith.constant 0 : index
    %9 = vector.load %arg2[%c0_3, %c0_4] : memref<128x128xbf16, #tpu.memory_space<vmem>>, vector<128x128xbf16>
    %cst = arith.constant dense<0.000000e+00> : vector<256x128xf32>
    %10 = tpu.matmul %0, %9, %cst {dimension_numbers = #tpu.dot_dimension_numbers<[1], [0], [0], [1], [0, 0, 1, 1], [], []>} : vector<256x128xbf16>, vector<128x128xbf16>, vector<256x128xf32> -> vector<256x128xf32>
    %11 = vector.broadcast %3 : vector<1x128xf32> to vector<256x128xf32>
    %12 = arith.addf %10, %11 : vector<256x128xf32>
    %cst_5 = arith.constant dense<0.000000e+00> : vector<256xf32>
    %13 = vector.multi_reduction <add>, %12, %cst_5 [1] : vector<256x128xf32> to vector<256xf32>
    %14 = vector.shape_cast %13 : vector<256xf32> to vector<256x1xf32>
    %cst_6 = arith.constant 1.280000e+02 : f32
    %15 = vector.broadcast %cst_6 : f32 to vector<256x1xf32>
    %16 = arith.divf %14, %15 : vector<256x1xf32>
    %17 = arith.mulf %12, %12 : vector<256x128xf32>
    %cst_7 = arith.constant dense<0.000000e+00> : vector<256xf32>
    %18 = vector.multi_reduction <add>, %17, %cst_7 [1] : vector<256x128xf32> to vector<256xf32>
    %19 = vector.shape_cast %18 : vector<256xf32> to vector<256x1xf32>
    %cst_8 = arith.constant 1.280000e+02 : f32
    %20 = vector.broadcast %cst_8 : f32 to vector<256x1xf32>
    %21 = arith.divf %19, %20 : vector<256x1xf32>
    %22 = arith.mulf %16, %16 : vector<256x1xf32>
    %23 = arith.subf %21, %22 : vector<256x1xf32>
    %cst_9 = arith.constant 0.000000e+00 : f32
    %24 = vector.broadcast %cst_9 : f32 to vector<256x1xf32>
    %25 = arith.maximumf %23, %24 : vector<256x1xf32>
    %26 = vector.broadcast %16 : vector<256x1xf32> to vector<256x128xf32>
    %27 = arith.subf %12, %26 : vector<256x128xf32>
    %cst_10 = arith.constant 9.99999974E-6 : f32
    %28 = vector.broadcast %cst_10 : f32 to vector<256x1xf32>
    %29 = arith.addf %25, %28 : vector<256x1xf32>
    %30 = math.rsqrt %29 : vector<256x1xf32>
    %31 = vector.broadcast %30 : vector<256x1xf32> to vector<256x128xf32>
    %32 = arith.mulf %27, %31 : vector<256x128xf32>
    %33 = vector.broadcast %4 : vector<1x128xf32> to vector<256x128xf32>
    %34 = arith.mulf %32, %33 : vector<256x128xf32>
    %35 = vector.broadcast %5 : vector<1x128xf32> to vector<256x128xf32>
    %36 = arith.addf %34, %35 : vector<256x128xf32>
    %cst_11 = arith.constant 0.000000e+00 : f32
    %37 = vector.broadcast %cst_11 : f32 to vector<256x128xf32>
    %38 = arith.cmpf ogt, %36, %37 : vector<256x128xf32>
    %cst_12 = arith.constant 0.00999999977 : f32
    %39 = vector.broadcast %cst_12 : f32 to vector<256x128xf32>
    %40 = arith.mulf %39, %36 : vector<256x128xf32>
    %41 = arith.select %38, %36, %40 : vector<256x128xi1>, vector<256x128xf32>
    %42 = arith.truncf %41 : vector<256x128xf32> to vector<256x128xbf16>
    %c0_13 = arith.constant 0 : index
    %c0_14 = arith.constant 0 : index
    %43 = vector.load %arg3[%c0_13, %c0_14] : memref<128x128xbf16, #tpu.memory_space<vmem>>, vector<128x128xbf16>
    %cst_15 = arith.constant dense<0.000000e+00> : vector<256x128xf32>
    %44 = tpu.matmul %42, %43, %cst_15 {dimension_numbers = #tpu.dot_dimension_numbers<[1], [0], [0], [1], [0, 0, 1, 1], [], []>} : vector<256x128xbf16>, vector<128x128xbf16>, vector<256x128xf32> -> vector<256x128xf32>
    %45 = vector.broadcast %6 : vector<1x128xf32> to vector<256x128xf32>
    %46 = arith.addf %44, %45 : vector<256x128xf32>
    %cst_16 = arith.constant dense<0.000000e+00> : vector<256xf32>
    %47 = vector.multi_reduction <add>, %46, %cst_16 [1] : vector<256x128xf32> to vector<256xf32>
    %48 = vector.shape_cast %47 : vector<256xf32> to vector<256x1xf32>
    %cst_17 = arith.constant 1.280000e+02 : f32
    %49 = vector.broadcast %cst_17 : f32 to vector<256x1xf32>
    %50 = arith.divf %48, %49 : vector<256x1xf32>
    %51 = arith.mulf %46, %46 : vector<256x128xf32>
    %cst_18 = arith.constant dense<0.000000e+00> : vector<256xf32>
    %52 = vector.multi_reduction <add>, %51, %cst_18 [1] : vector<256x128xf32> to vector<256xf32>
    %53 = vector.shape_cast %52 : vector<256xf32> to vector<256x1xf32>
    %cst_19 = arith.constant 1.280000e+02 : f32
    %54 = vector.broadcast %cst_19 : f32 to vector<256x1xf32>
    %55 = arith.divf %53, %54 : vector<256x1xf32>
    %56 = arith.mulf %50, %50 : vector<256x1xf32>
    %57 = arith.subf %55, %56 : vector<256x1xf32>
    %cst_20 = arith.constant 0.000000e+00 : f32
    %58 = vector.broadcast %cst_20 : f32 to vector<256x1xf32>
    %59 = arith.maximumf %57, %58 : vector<256x1xf32>
    %60 = vector.broadcast %50 : vector<256x1xf32> to vector<256x128xf32>
    %61 = arith.subf %46, %60 : vector<256x128xf32>
    %cst_21 = arith.constant 9.99999974E-6 : f32
    %62 = vector.broadcast %cst_21 : f32 to vector<256x1xf32>
    %63 = arith.addf %59, %62 : vector<256x1xf32>
    %64 = math.rsqrt %63 : vector<256x1xf32>
    %65 = vector.broadcast %64 : vector<256x1xf32> to vector<256x128xf32>
    %66 = arith.mulf %61, %65 : vector<256x128xf32>
    %67 = vector.broadcast %7 : vector<1x128xf32> to vector<256x128xf32>
    %68 = arith.mulf %66, %67 : vector<256x128xf32>
    %69 = vector.broadcast %8 : vector<1x128xf32> to vector<256x128xf32>
    %70 = arith.addf %68, %69 : vector<256x128xf32>
    %71 = arith.addf %1, %70 : vector<256x128xf32>
    %72 = arith.truncf %71 : vector<256x128xf32> to vector<256x128xbf16>
    %c0_22 = arith.constant 0 : index
    %c0_23 = arith.constant 0 : index
    %73 = vector.load %arg5[%c0_22, %c0_23] : memref<256x128xbf16, #tpu.memory_space<vmem>>, vector<256x128xbf16>
    tpu.vector_store %arg5[%c0_22, %c0_23], %72 {strides = array<i32>} : memref<256x128xbf16, #tpu.memory_space<vmem>>, vector<256x128xbf16>,
    return
  }
  func.func @transform_0(%arg0: i32) -> (i32, i32) {
    %c0_i32 = arith.constant 0 : i32
    %c0_i32_0 = arith.constant 0 : i32
    return %arg0, %c0_i32 : i32, i32
  }
  func.func @transform_1(%arg0: i32) -> (i32, i32) {
    %c0_i32 = arith.constant 0 : i32
    %c0_i32_0 = arith.constant 0 : i32
    %c0_i32_1 = arith.constant 0 : i32
    return %c0_i32, %c0_i32_0 : i32, i32
  }
  func.func @transform_2(%arg0: i32) -> (i32, i32) {
    %c0_i32 = arith.constant 0 : i32
    %c0_i32_0 = arith.constant 0 : i32
    %c0_i32_1 = arith.constant 0 : i32
    return %c0_i32, %c0_i32_0 : i32, i32
  }
  func.func @transform_3(%arg0: i32) -> (i32, i32) {
    %c0_i32 = arith.constant 0 : i32
    %c0_i32_0 = arith.constant 0 : i32
    %c0_i32_1 = arith.constant 0 : i32
    return %c0_i32, %c0_i32_0 : i32, i32
  }
  func.func @transform_4(%arg0: i32) -> (i32, i32) {
    %c0_i32 = arith.constant 0 : i32
    %c0_i32_0 = arith.constant 0 : i32
    return %arg0, %c0_i32 : i32, i32
  }
}

</mosaic_0001>

<bundles_post_ra>
// kernel: tpu_custom_call.1
= control target key start
LH: loop header
LB: loop body
LE: loop exit
PB: predicated region body
PF: predicated region fallthrough
CT: control target
= control target key end

     0   :  { %9 = vsyncpa [#allocation3], 0  ;;  %s4356_s0 = inlined_call_operand.hbm [shape: bf16[2048,128], index: 0, kind: input, shape index: {}]   ;;  %s4357_s1 = inlined_call_operand.hbm [shape: bf16[128,128], index: 1, kind: input, shape index: {}]   ;;  %s4358_s2 = inlined_call_operand.hbm [shape: bf16[128,128], index: 2, kind: input, shape index: {}]   ;;  %s4359_s3 = inlined_call_operand.vmem [shape: f32[8,128], index: 3, kind: input, shape index: {}]   ;;  %s4360_s4 = inlined_call_operand.hbm [shape: bf16[2048,128], index: 4, kind: output, shape index: {}]  }
   0x1   :  { %11 = vsyncpa [#allocation3 + $0x1], 0 }
   0x2   :  { %12 = vsyncpa [#allocation6], 0 }
   0x3   :  { %13 = vsyncpa [#allocation4], 0 }
   0x4   :  { %15 = vsyncpa [#allocation4 + $0x1], 0  ;;  %s3128_s15 = smov 0   ;;  %s3130_s16 = smov 0  }
   0x5   :  { %s3132_s17 = smov 0   ;;  %s3134_s18 = smov 0  }
   0x6 LB: > { %s3149_s19 = sadd.s32 4294967295, %s3093_s18   ;;  %s2318_s20 = sadd.s32 4294967294, %s3093_s18   ;;  %s3093_s18 = sphi %s3134_s18, %s4379_s18   ;;  %s3089_s17 = sphi %s3132_s17, %s4378_s17   ;;  %s3085_s16 = sphi %s3130_s16, %s4377_s16   ;;  %s3081_s15 = sphi %s3128_s15, %s4376_s15  }
   0x7   : > { %p41_p0 = scmp.ne.s32.totalorder %s3085_s16, %s3081_s15  ;;  %p4361_p1 = scmp.eq.s32.totalorder %s3149_s19, 0 }
   0x8   : > { %p134_p3 = scmp.eq.s32.totalorder %s2318_s20, 7  ;;  %p2319_p5 = scmp.ge.s32.totalorder %s3093_s18, 1 }
   0x9   : > { %p3158_p4 = por %p4361_p1, %p41_p0  ;;  %p141_p7 = scmp.lt.s32.totalorder %s3093_s18, 9 }
   0xa   : > { %p3163_p6 = por %p134_p3, %p41_p0  ;;  %s3095_s24 = smov [#allocation5]  }
   0xb   : > { %s4364_s21 = scalar_select %p3158_p4, 1, 0 }
   0xc   : > { %s4365_s22 = scalar_select %p3163_p6, 1, 0 }
   0xd   : > { %p3168_p8 = pnand %p2319_p5, %p141_p7  ;;  %s153_s25 = sshll.u32 %s3095_s24, 4  ;;  %s154_s25 = int_to_ptr.vmem [resolvable:$true] %s153_s25 }
   0xe   : > { %s3096_s27 = smov [#allocation7]   ;;  %s2937_s5 = scalar_lea.hbm %s4357_s1, 1024 }
   0xf   : > { %s4366_s23 = scalar_select %p3168_p8, 1, 0 }
  0x10   : > { %p2685_p9 = pneg %p3168_p8  ;;  %s166_s28 = sshll.u32 %s3096_s27, 4  ;;  %s3180_s28 = int_to_ptr.vmem [resolvable:$true] %s166_s28 }
  0x11   : > { %p2938_p11 = scmp.ne.s32.totalorder %s4357_s1, %s2937_s5  ;;  %p2944_p3 = scmp.lt.u32.totalorder %s2937_s5, %s4357_s1 }
  0x12   : > { %p3176_p10 = pnand %p2685_p9, %p4361_p1 }
  0x14   : > { %p2939_p12 = pneg %p3176_p10 }
  0x16   : > { %p2940_p13 = pnand %p2939_p12, %p2938_p11 }
  0x18   : > { %p2941_p0 = pneg %p2940_p13 }
  0x1a   : > { %p2946_p5 = pnand %p2944_p3, %p2941_p0 }
  0x1c   : > { %2949 = shalt.err (!%p2946_p5)
}
  0x1d   : > { %s2950_s10 = scalar_lea.vmem %s154_s25, 1024  ;;  %p2958_p2 = scmp.lt.s32.totalorder %s154_s25, %s154_s25 }
  0x1e   : > { %p2951_p7 = scmp.ne.s32.totalorder %s154_s25, %s2950_s10  ;;  %p2959_p6 = scmp.lt.s32.totalorder %s2950_s10, %s2950_s10 }
  0x20   : > { %p2953_p9 = pnand %p2951_p7, %p2939_p12  ;;  %p2960_p4 = por %p2959_p6, %p2958_p2 }
  0x22   : > { %p2954_p1 = pneg %p2953_p9 }
  0x24   : > { %p2961_p8 = pnand %p2960_p4, %p2954_p1 }
  0x26   : > { %2964 = shalt.err (!%p2961_p8)
}
  0x27   : > { %s3097_s11 = smov 64   ;;  %s3098_s12 = smov 4  }
  0x28   : > { %2688 = dma.hbm_to_vmem [thread:$0]  (!%p3176_p10), %s4357_s1, 1024, %s154_s25, [#allocation6], %s3097_s11, %s3097_s11, %s3098_s12  }
  0x29   : > { %s2965_s27 = scalar_lea.hbm %s4358_s2, 1024 }
  0x2a   : > { %p2966_p1 = scmp.ne.s32.totalorder %s4358_s2, %s2965_s27  ;;  %p2972_p6 = scmp.lt.u32.totalorder %s2965_s27, %s4358_s2 }
  0x2c   : > { %p2968_p2 = pnand %p2966_p1, %p2939_p12 }
  0x2e   : > { %p2969_p4 = pneg %p2968_p2 }
  0x30   : > { %p2974_p8 = pnand %p2972_p6, %p2969_p4 }
  0x32   : > { %2977 = shalt.err (!%p2974_p8)
}
  0x33   : > { %s2978_s25 = scalar_lea.vmem %s3180_s28, 1024  ;;  %p2986_p3 = scmp.lt.s32.totalorder %s3180_s28, %s3180_s28 }
  0x34   : > { %p2979_p11 = scmp.ne.s32.totalorder %s3180_s28, %s2978_s25  ;;  %p2987_p5 = scmp.lt.s32.totalorder %s2978_s25, %s2978_s25 }
  0x36   : > { %p2981_p13 = pnand %p2979_p11, %p2939_p12  ;;  %p2988_p7 = por %p2987_p5, %p2986_p3 }
  0x38   : > { %p2982_p0 = pneg %p2981_p13 }
  0x3a   : > { %p2989_p9 = pnand %p2988_p7, %p2982_p0 }
  0x3c   : > { %2992 = shalt.err (!%p2989_p9)
}
  0x3d   : > { %2691 = dma.hbm_to_vmem [thread:$0]  (!%p3176_p10), %s4358_s2, 1024, %s3180_s28, [#allocation6], %s3097_s11, %s3097_s11, %s3098_s12  }
  0x3e   : > { %s3236_s26 = sadd.s32 1, %s3093_s18   ;;  %s28_s9 = sadd.s32 1, %s3089_s17 }
  0x3f   : > { %s25_s10 = ssub.s32 %s3093_s18, %s3236_s26  ;;  %p35_p12 = scmp.ne.s32.totalorder %s3089_s17, %s3085_s16 }
  0x40   : > { %p26_p1 = scmp.eq.s32.totalorder %s25_s10, 0  ;;  %p36_p2 = scmp.eq.s32.totalorder %s3093_s18, 0 }
  0x41   : > { %p4368_p4 = scmp.eq.s32.totalorder %s3149_s19, 7  ;;  %p2702_p8 = scmp.lt.s32.totalorder %s3093_s18, 8 }
  0x42   : > { %s3252_s14 = scalar_select %p26_p1, %s3089_s17, %s28_s9  }
  0x43   : > { %p3246_p6 = por %p4368_p4, %p35_p12  ;;  %p37_p11 = por %p36_p2, %p35_p12 }
  0x44   : > { %s183_s20 = sand.u32 1, %s3089_s17   ;;  %s2400_s28 = sshll.u32 %s3093_s18, 11 }
  0x45   : > { %s2323_s24 = sshll.u32 %s183_s20, 7  ;;  %s3259_s30 = scalar_lea.hbm %s4356_s0, %s2400_s28 }
  0x46   : > { %s187_s5 = scalar_lea.vmem [#allocation2], %s2323_s24  ;;  %p3263_p10 = pnand %p2702_p8, %p37_p11 }
  0x47   : > { %s194_s6 = sshll.u32 %s187_s5, 4  ;;  %s3267_s7 = scalar_lea.sflag [#allocation3], %s183_s20  ;;  %s3261_s6 = int_to_ptr.vmem [resolvable:$true] %s194_s6 }
  0x48   : > { %s2993_s8 = scalar_lea.hbm %s3259_s30, 2048  ;;  %p2995_p0 = pneg %p3263_p10 }
  0x49   : > { %p2994_p13 = scmp.ne.s32.totalorder %s3259_s30, %s2993_s8  ;;  %s2998_s24 = scalar_lea.hbm %s4356_s0, 16384 }
  0x4a   : > { %p2999_p7 = scmp.lt.u32.totalorder %s3259_s30, %s4356_s0  ;;  %p3000_p9 = scmp.lt.u32.totalorder %s2998_s24, %s2993_s8 }
  0x4b   : > { %p2996_p3 = pnand %p2995_p0, %p2994_p13  ;;  %p3002_p1 = scmp.lt.u32.totalorder %s2993_s8, %s3259_s30 }
  0x4c   : > { %p3001_p12 = por %p3000_p9, %p2999_p7 }
  0x4d   : > { %p2997_p5 = pneg %p2996_p3 }
  0x4e   : > { %p3003_p2 = por %p3002_p1, %p3001_p12 }
  0x50   : > { %p3004_p4 = pnand %p3003_p2, %p2997_p5 }
  0x52   : > { %3007 = shalt.err (!%p3004_p4)
}
  0x53   : > { %s3008_s20 = scalar_lea.vmem %s3261_s6, 2048  ;;  %s3099_s29 = smov [#allocation2]  }
  0x54   : > { %p3009_p8 = scmp.ne.s32.totalorder %s3261_s6, %s3008_s20  ;;  %s3013_s5 = sshll.u32 %s3099_s29, 4  ;;  %s3014_s5 = int_to_ptr.vmem [resolvable:$false] %s3013_s5 }
  0x55   : > { %s3015_s9 = scalar_lea.vmem %s3014_s5, 4096  ;;  %p3016_p3 = scmp.lt.s32.totalorder %s3261_s6, %s3014_s5 }
  0x56   : > { %p3011_p11 = pnand %p3009_p8, %p2995_p0  ;;  %p3017_p7 = scmp.lt.s32.totalorder %s3015_s9, %s3008_s20 }
  0x58   : > { %p3012_p13 = pneg %p3011_p11  ;;  %p3018_p9 = por %p3017_p7, %p3016_p3 }
  0x5a   : > { %p3019_p12 = pnand %p3018_p9, %p3012_p13 }
  0x5c   : > { %3022 = shalt.err (!%p3019_p12)
}
  0x5d   : > { %2695 = dma.hbm_to_vmem [thread:$0]  (!%p3263_p10), %s3259_s30, 2048, %s3261_s6, %s3267_s7, %s3097_s11, %s3097_s11, %s3098_s12  }
  0x5e   : > { %p4371_p0 = scmp.ne.s32.totalorder %s4366_s23, 0 }
  0x5f   : > { %s3301_s8 = sand.u32 (!%p4371_p0), 1, %s3085_s16   ;;  %p4372_p5 = scmp.ne.s32.totalorder (!%p4371_p0), %s4364_s21, 0 }
  0x60   : > { %206 = sbr.rel (%p4371_p0) target bundleno = 1066 (0x42a), region = 36  ;;  %s2327_s10 = sshll.u32 (!%p4371_p0), %s3301_s8, 7 }
  0x61   : > { %s209_s24 = scalar_lea.sflag (!%p4371_p0), [#allocation3], %s3301_s8  ;;  %s3307_s25 = scalar_lea.vmem (!%p4371_p0), [#allocation2], %s2327_s10 }
  0x67   : > { %3068 = dma.done.wait (%p4372_p5), %s209_s24, 2048  }
  0x68   : > { %3070 = vsyncadd (%p4372_p5), %s209_s24, 4294965248  ;;  %p4373_p10 = scmp.eq.s32.totalorder %s3149_s19, 0 }
  0x6a   : > { %3072 = dma.done.wait (%p4373_p10), [#allocation6], 2048   ;;  %p4374_p1 = pmov %p4373_p10 }
  0x6b   : > { %v2744_v0 = vld [vmem:[#allocation5] sm:$0xff]   ;;  %v2745_v1 = vld [vmem:[#allocation5 + $0x8] sm:$0xff]   ;;  %v2746_v2 = vld [vmem:[#allocation5 + $0x10] sm:$0xff]   ;;  %v329_v24 = vlaneseq  ;;  %s4062_s30 = scalar_lea.vmem [#allocation8], %s2327_s10  ;;  %s2433_s6 = sshll.u32 %s3149_s19, 11 }
  0x6c   : > { %3074 = vsyncadd (%p4374_p1), [#allocation6], 4294965248  ;;  %2577 = vmatprep.subr.bf16.mxu0 %v2744_v0  ;;  %v2747_v3 = vld [vmem:[#allocation5 + $0x18] sm:$0xff]   ;;  %v248_v4 = vld [vmem:[%s3307_s25] sm:$0xff]   ;;  %s2226_s7 = sshll.u32 %s4062_s30, 4  ;;  %s4310_s20 = scalar_lea.hbm %s4360_s4, %s2433_s6  ;;  %s4312_s7 = int_to_ptr.vmem [resolvable:$true] %s2226_s7 }
  0x6d   : > { %2578 = vmatpush3.bf16.msra.mxu0 %v2744_v0  ;;  %2593 = vmatprep.mubr.bf16.mxu0 %v248_v4  ;;  %v2748_v5 = vld [vmem:[#allocation5 + $0x20] sm:$0xff]   ;;  %v2749_v6 = vld [vmem:[#allocation5 + $0x28] sm:$0xff]   ;;  %v2750_v7 = vld [vmem:[#allocation5 + $0x30] sm:$0xff]   ;;  %v3333_v25 = vshrl.u32 %v329_v24, 7  ;;  %s2213_s29 = scalar_lea.sflag [#allocation4], %s3301_s8  ;;  %s3023_s5 = scalar_lea.vmem %s4312_s7, 2048 }
  0x6e   : > { %2579 = vmatprep.subr.bf16.mxu0 %v2745_v1  ;;  %v2751_v8 = vld [vmem:[#allocation5 + $0x38] sm:$0xff]   ;;  %v250_v9 = vld [vmem:[%s3307_s25 + $0x8] sm:$0xff]   ;;  %v252_v10 = vld [vmem:[%s3307_s25 + $0x10] sm:$0xff]   ;;  %p3024_p2 = scmp.ne.s32.totalorder %s4312_s7, %s3023_s5  ;;  %s3100_s19 = smov [#allocation8]  }
  0x6f   : > { %v254_v11 = vld [vmem:[%s3307_s25 + $0x18] sm:$0xff]   ;;  %v256_v12 = vld [vmem:[%s3307_s25 + $0x20] sm:$0xff]   ;;  %v258_v13 = vld [vmem:[%s3307_s25 + $0x28] sm:$0xff]   ;;  %v331_v26 = vsub.s32 0, %v3333_v25  ;;  %s3027_s9 = sshll.u32 %s3100_s19, 4  ;;  %s3028_s9 = int_to_ptr.vmem [resolvable:$false] %s3027_s9 }
  0x70   : > { %v260_v14 = vld [vmem:[%s3307_s25 + $0x30] sm:$0xff]   ;;  %v262_v15 = vld [vmem:[%s3307_s25 + $0x38] sm:$0xff]   ;;  %v264_v16 = vld [vmem:[%s3307_s25 + $0x40] sm:$0xff]   ;;  %p3025_p4 = pnand %p3024_p2, %p3246_p6  ;;  %s3029_s10 = scalar_lea.vmem %s3028_s9, 4096 }
  0x71   : > { %2580 = vmatpush3.bf16.msra.mxu0 %v2745_v1  ;;  %v266_v17 = vld [vmem:[%s3307_s25 + $0x48] sm:$0xff]   ;;  %v268_v18 = vld [vmem:[%s3307_s25 + $0x50] sm:$0xff]   ;;  %v270_v19 = vld [vmem:[%s3307_s25 + $0x58] sm:$0xff]   ;;  %p3030_p11 = scmp.lt.s32.totalorder %s4312_s7, %s3028_s9  ;;  %p3031_p13 = scmp.lt.s32.totalorder %s3029_s10, %s3023_s5 }
  0x72   : > { %2581 = vmatprep.subr.bf16.mxu0 %v2746_v2  ;;  %v272_v20 = vld [vmem:[%s3307_s25 + $0x60] sm:$0xff]   ;;  %v274_v21 = vld [vmem:[%s3307_s25 + $0x68] sm:$0xff]   ;;  %v276_v22 = vld [vmem:[%s3307_s25 + $0x70] sm:$0xff]   ;;  %p3026_p8 = pneg %p3025_p4 }
  0x73   : > { %v278_v23 = vld [vmem:[%s3307_s25 + $0x78] sm:$0xff]   ;;  %v3339_v27 = vld [vmem:[%s4359_s3] sm:$0xff]  ;;  %v2769_v63 = vld [vmem:[#allocation7 + $0x8] sm:$0xff]   ;;  %p3032_p3 = por %p3031_p13, %p3030_p11 }
  0x74   : > { %v3342_v28 = vrot.slane %v3339_v27, %v331_v26  ;;  %v2768_v59 = vld [vmem:[#allocation7] sm:$0xff]  }
  0x75   : > { %2582 = vmatpush3.bf16.msra.mxu0 %v2746_v2  ;;  %2625 = vmatprep.subr.bf16.mxu1 %v2768_v59  ;;  %p3033_p7 = pnand %p3032_p3, %p3026_p8 }
  0x76   : > { %2583 = vmatprep.subr.bf16.mxu0 %v2747_v3  ;;  %2626 = vmatpush3.bf16.msra.mxu1 %v2768_v59 }
  0x77   : > { %2627 = vmatprep.subr.bf16.mxu1 %v2769_v63 }
  0x79   : > { %2584 = vmatpush3.bf16.msra.mxu0 %v2747_v3 }
  0x7a   : > { %2585 = vmatprep.subr.bf16.mxu0 %v2748_v5  ;;  %2628 = vmatpush3.bf16.msra.mxu1 %v2769_v63 }
  0x7d   : > { %2586 = vmatpush3.bf16.msra.mxu0 %v2748_v5 }
  0x7e   : > { %2587 = vmatprep.subr.bf16.mxu0 %v2749_v6 }
  0x81   : > { %2588 = vmatpush3.bf16.msra.mxu0 %v2749_v6 }
  0x82   : > { %2589 = vmatprep.subr.bf16.mxu0 %v2750_v7 }
  0x85   : > { %2590 = vmatpush3.bf16.msra.mxu0 %v2750_v7 }
  0x86   : > { %2591 = vmatprep.subr.bf16.mxu0 %v2751_v8 }
  0x89   : > { %2592 = vmatpush3.bf16.msra.mxu0 %v2751_v8  ;;  %v2770_v8 = vld [vmem:[#allocation7 + $0x10] sm:$0xff]  }
  0x8a   : > { %2629 = vmatprep.subr.bf16.mxu1 %v2770_v8 }
  0x8b   : > { %2630 = vmatpush3.bf16.msra.mxu1 %v2770_v8 }
  0x8c   : > { %2594 = vmatmul.mubr.bf16.vlgmr.msra.gmra.mrb[0].mxu0 %v250_v9 }
  0x8d   : > { %2597 = vmatprep.mubr.bf16.mxu0 %v252_v10 }
  0x94   : > { %2598 = vmatmul.mubr.bf16.gmra.mrb[4].mxu0 %v254_v11 }
  0x95   : > { %2601 = vmatprep.mubr.bf16.mxu0 %v256_v12  ;;  %v2771_v12 = vld [vmem:[#allocation7 + $0x18] sm:$0xff]  }
  0x96   : > { %2631 = vmatprep.subr.bf16.mxu1 %v2771_v12 }
  0x97   : > { %2632 = vmatpush3.bf16.msra.mxu1 %v2771_v12 }
  0x9c   : > { %2602 = vmatmul.mubr.bf16.gmra.mrb[8].mxu0 %v258_v13 }
  0x9d   : > { %2605 = vmatprep.mubr.bf16.mxu0 %v260_v14 }
  0xa4   : > { %2606 = vmatmul.mubr.bf16.gmra.mrb[12].mxu0 %v262_v15 }
  0xa5   : > { %2609 = vmatprep.mubr.bf16.mxu0 %v264_v16 }
  0xac   : > { %2610 = vmatmul.mubr.bf16.gmra.mrb[16].mxu0 %v266_v17 }
  0xad   : > { %2613 = vmatprep.mubr.bf16.mxu0 %v268_v18 }
  0xb4   : > { %2614 = vmatmul.mubr.bf16.gmra.mrb[20].mxu0 %v270_v19 }
  0xb5   : > { %2617 = vmatprep.mubr.bf16.mxu0 %v272_v20 }
  0xbc   : > { %2618 = vmatmul.mubr.bf16.gmra.mrb[24].mxu0 %v274_v21 }
  0xbd   : > { %2621 = vmatprep.mubr.bf16.mxu0 %v276_v22  ;;  %v2772_v22 = vld [vmem:[#allocation7 + $0x20] sm:$0xff]  }
  0xbe   : > { %2633 = vmatprep.subr.bf16.mxu1 %v2772_v22 }
  0xbf   : > { %2634 = vmatpush3.bf16.msra.mxu1 %v2772_v22 }
  0xc4   : > { %2622 = vmatmul.mubr.bf16.gmra.mrb[28].mxu0 %v278_v23 }
 0x15f   : > { %v2595_v29 = vpop.f32.mrb[0].mxu0 }
 0x160   : > { %v3345_v30 = vadd.f32 %v2595_v29, %v3342_v28  ;;  %v511_v31 = vpop.f32.mrb[1].mxu0 }
 0x161   : > { %v3348_v32 = vadd.f32 %v511_v31, %v3342_v28  ;;  %v2596_v33 = vpop.f32.mrb[2].mxu0  ;;  %v2773_v31 = vld [vmem:[#allocation7 + $0x28] sm:$0xff]  }
 0x162   : > { %642 = vadd.xlane.f32.xlu1 %v3345_v30  ;;  %v514_v34 = vpop.f32.mrb[3].mxu0  ;;  %v3353_v35 = vadd.f32 %v2596_v33, %v3342_v28  ;;  %v737_v36 = vmul.f32 %v3345_v30, %v3345_v30  ;;  %2635 = vmatprep.subr.bf16.mxu1 %v2773_v31 }
 0x163   : > { %638 = vadd.xlane.f32.xlu0 %v3348_v32  ;;  %v3359_v38 = vadd.f32 %v514_v34, %v3342_v28  ;;  %v735_v44 = vmul.f32 %v3348_v32, %v3348_v32  ;;  %2636 = vmatpush3.bf16.msra.mxu1 %v2773_v31 }
 0x164   : > { %v738_v39 = vmul.f32 %v3353_v35, %v3353_v35 }
 0x165   : > { %v736_v43 = vmul.f32 %v3359_v38, %v3359_v38 }
 0x166   : > { %644 = vadd.xlane.f32.xlu1 %v3353_v35 }
 0x167   : > { %771 = vadd.xlane.f32.xlu0 %v737_v36  ;;  %v2599_v37 = vpop.f32.mrb[4].mxu0 }
 0x168   : > { %v527_v40 = vpop.f32.mrb[5].mxu0  ;;  %v3372_v48 = vadd.f32 %v2599_v37, %v3342_v28 }
 0x169   : > { %v2600_v41 = vpop.f32.mrb[6].mxu0  ;;  %v3380_v52 = vadd.f32 %v527_v40, %v3342_v28 }
 0x16a   : > { %773 = vadd.xlane.f32.xlu1 %v738_v39  ;;  %v530_v42 = vpop.f32.mrb[7].mxu0  ;;  %v3369_v45 = vadd.f32 %v2600_v41, %v3342_v28  ;;  %v741_v56 = vmul.f32 %v3372_v48, %v3372_v48 }
 0x16b   : > { %640 = vadd.xlane.f32.xlu0 %v3359_v38  ;;  %v3377_v51 = vadd.f32 %v530_v42, %v3342_v28  ;;  %v739_v61 = vmul.f32 %v3380_v52, %v3380_v52 }
 0x16c   : > { %v742_v54 = vmul.f32 %v3369_v45, %v3369_v45 }
 0x16d   : > { %v740_v60 = vmul.f32 %v3377_v51, %v3377_v51 }
 0x16e   : > { %769 = vadd.xlane.f32.xlu1 %v736_v43  ;;  %v2774_v43 = vld [vmem:[#allocation7 + $0x30] sm:$0xff]  }
 0x16f   : > { %767 = vadd.xlane.f32.xlu0 %v735_v44  ;;  %v2603_v46 = vpop.f32.mrb[8].mxu0  ;;  %2637 = vmatprep.subr.bf16.mxu1 %v2774_v43 }
 0x170   : > { %v543_v47 = vpop.f32.mrb[9].mxu0  ;;  %v3405_v3 = vadd.f32 %v2603_v46, %v3342_v28  ;;  %2638 = vmatpush3.bf16.msra.mxu1 %v2774_v43 }
 0x171   : > { %v2604_v49 = vpop.f32.mrb[10].mxu0  ;;  %v3422_v11 = vadd.f32 %v543_v47, %v3342_v28 }
 0x172   : > { %652 = vadd.xlane.f32.xlu1 %v3369_v45  ;;  %v546_v50 = vpop.f32.mrb[11].mxu0  ;;  %v3399_v62 = vadd.f32 %v2604_v49, %v3342_v28  ;;  %v745_v17 = vmul.f32 %v3405_v3, %v3405_v3  ;;  %v2775_v49 = vld [vmem:[#allocation7 + $0x38] sm:$0xff]  }
 0x173   : > { %650 = vadd.xlane.f32.xlu0 %v3372_v48  ;;  %v3419_v10 = vadd.f32 %v546_v50, %v3342_v28  ;;  %v743_v26 = vmul.f32 %v3422_v11, %v3422_v11  ;;  %2639 = vmatprep.subr.bf16.mxu1 %v2775_v49 }
 0x174   : > { %v746_v14 = vmul.f32 %v3399_v62, %v3399_v62  ;;  %2640 = vmatpush3.bf16.msra.mxu1 %v2775_v49 }
 0x175   : > { %v744_v24 = vmul.f32 %v3419_v10, %v3419_v10 }
 0x176   : > { %648 = vadd.xlane.f32.xlu1 %v3377_v51 }
 0x177   : > { %646 = vadd.xlane.f32.xlu0 %v3380_v52  ;;  %v3384_v53 = vpop.f32.mrb[12].mxu0 }
 0x178   : > { %v3388_v55 = vpop.f32.mrb[13].mxu0  ;;  %v3454_v37 = vadd.f32 %v3384_v53, %v3342_v28 }
 0x179   : > { %v2608_v57 = vpop.f32.mrb[14].mxu0  ;;  %v3473_v47 = vadd.f32 %v3388_v55, %v3342_v28 }
 0x17a   : > { %781 = vadd.xlane.f32.xlu1 %v742_v54  ;;  %v3392_v58 = vpop.f32.mrb[15].mxu0  ;;  %v3447_v29 = vadd.f32 %v2608_v57, %v3342_v28  ;;  %v749_v57 = vmul.f32 %v3454_v37, %v3454_v37 }
 0x17b   : > { %779 = vadd.xlane.f32.xlu0 %v741_v56  ;;  %v3469_v46 = vadd.f32 %v3392_v58, %v3342_v28 }
 0x17c   : > { %v750_v53 = vmul.f32 %v3447_v29, %v3447_v29 }
 0x17d   : > { %v748_v63 = vmul.f32 %v3469_v46, %v3469_v46 }
 0x17e   : > { %777 = vadd.xlane.f32.xlu1 %v740_v60 }
 0x17f   : > { %775 = vadd.xlane.f32.xlu0 %v739_v61  ;;  %v2611_v0 = vpop.f32.mrb[16].mxu0 }
 0x180   : > { %v3402_v1 = vadd.f32 %v2611_v0, %v3342_v28  ;;  %v575_v2 = vpop.f32.mrb[17].mxu0  ;;  %v747_v0 = vmul.f32 %v3473_v47, %v3473_v47 }
 0x181   : > { %v3408_v4 = vadd.f32 %v575_v2, %v3342_v28  ;;  %v2612_v5 = vpop.f32.mrb[18].mxu0 }
 0x182   : > { %660 = vadd.xlane.f32.xlu1 %v3399_v62  ;;  %v3412_v6 = vadd.f32 %v2612_v5, %v3342_v28  ;;  %v578_v7 = vpop.f32.mrb[19].mxu0  ;;  %v753_v2 = vmul.f32 %v3402_v1, %v3402_v1 }
 0x183   : > { %658 = vadd.xlane.f32.xlu0 %v3405_v3  ;;  %v3416_v9 = vadd.f32 %v578_v7, %v3342_v28  ;;  %v751_v7 = vmul.f32 %v3408_v4, %v3408_v4 }
 0x185   : > { %v752_v5 = vmul.f32 %v3416_v9, %v3416_v9 }
 0x186   : > { %656 = vadd.xlane.f32.xlu1 %v3419_v10 }
 0x187   : > { %654 = vadd.xlane.f32.xlu0 %v3422_v11  ;;  %v2615_v13 = vpop.f32.mrb[20].mxu0 }
 0x188   : > { %v3429_v15 = vadd.f32 %v2615_v13, %v3342_v28  ;;  %v591_v16 = vpop.f32.mrb[21].mxu0 }
 0x189   : > { %v3434_v18 = vadd.f32 %v591_v16, %v3342_v28  ;;  %v2616_v19 = vpop.f32.mrb[22].mxu0 }
 0x18a   : > { %789 = vadd.xlane.f32.xlu1 %v746_v14  ;;  %v3437_v20 = vadd.f32 %v2616_v19, %v3342_v28  ;;  %v594_v21 = vpop.f32.mrb[23].mxu0  ;;  %v757_v12 = vmul.f32 %v3429_v15, %v3429_v15 }
 0x18b   : > { %787 = vadd.xlane.f32.xlu0 %v745_v17  ;;  %v3440_v23 = vadd.f32 %v594_v21, %v3342_v28  ;;  %v755_v14 = vmul.f32 %v3434_v18, %v3434_v18 }
 0x18c   : > { %v758_v8 = vmul.f32 %v3437_v20, %v3437_v20 }
 0x18d   : > { %v756_v13 = vmul.f32 %v3440_v23, %v3440_v23 }
 0x18e   : > { %785 = vadd.xlane.f32.xlu1 %v744_v24 }
 0x18f   : > { %783 = vadd.xlane.f32.xlu0 %v743_v26  ;;  %v2619_v33 = vpop.f32.mrb[24].mxu0 }
 0x190   : > { %v3450_v34 = vadd.f32 %v2619_v33, %v3342_v28  ;;  %v607_v36 = vpop.f32.mrb[25].mxu0 }
 0x191   : > { %v3457_v39 = vadd.f32 %v607_v36, %v3342_v28  ;;  %v2620_v40 = vpop.f32.mrb[26].mxu0 }
 0x192   : > { %668 = vadd.xlane.f32.xlu1 %v3447_v29  ;;  %v3461_v41 = vadd.f32 %v2620_v40, %v3342_v28  ;;  %v610_v42 = vpop.f32.mrb[27].mxu0  ;;  %v761_v17 = vmul.f32 %v3450_v34, %v3450_v34 }
 0x193   : > { %666 = vadd.xlane.f32.xlu0 %v3454_v37  ;;  %v3465_v44 = vadd.f32 %v610_v42, %v3342_v28  ;;  %v759_v21 = vmul.f32 %v3457_v39, %v3457_v39 }
 0x194   : > { %v762_v16 = vmul.f32 %v3461_v41, %v3461_v41 }
 0x195   : > { %v760_v19 = vmul.f32 %v3465_v44, %v3465_v44 }
 0x196   : > { %664 = vadd.xlane.f32.xlu1 %v3469_v46 }
 0x197   : > { %662 = vadd.xlane.f32.xlu0 %v3473_v47  ;;  %v2623_v50 = vpop.f32.mrb[28].mxu0 }
 0x198   : > { %v3480_v54 = vadd.f32 %v2623_v50, %v3342_v28  ;;  %v623_v56 = vpop.f32.mrb[29].mxu0 }
 0x199   : > { %v3485_v55 = vadd.f32 %v623_v56, %v3342_v28  ;;  %v2624_v58 = vpop.f32.mrb[30].mxu0 }
 0x19a   : > { %797 = vadd.xlane.f32.xlu1 %v750_v53  ;;  %v3488_v59 = vadd.f32 %v2624_v58, %v3342_v28  ;;  %v626_v60 = vpop.f32.mrb[31].mxu0  ;;  %v765_v31 = vmul.f32 %v3480_v54, %v3480_v54 }
 0x19b   : > { %795 = vadd.xlane.f32.xlu0 %v749_v57  ;;  %v3491_v61 = vadd.f32 %v626_v60, %v3342_v28  ;;  %v754_v28 = vmul.f32 %v3412_v6, %v3412_v6  ;;  %v763_v24 = vmul.f32 %v3485_v55, %v3485_v55 }
 0x19c   : > { %v766_v26 = vmul.f32 %v3488_v59, %v3488_v59 }
 0x19d   : > { %v764_v22 = vmul.f32 %v3491_v61, %v3491_v61 }
 0x19e   : > { %793 = vadd.xlane.f32.xlu1 %v748_v63 }
 0x19f   : > { %791 = vadd.xlane.f32.xlu0 %v747_v0 }
 0x1a2   : > { %676 = vadd.xlane.f32.xlu1 %v3412_v6 }
 0x1a3   : > { %674 = vadd.xlane.f32.xlu0 %v3402_v1 }
 0x1a6   : > { %672 = vadd.xlane.f32.xlu1 %v3416_v9 }
 0x1a7   : > { %670 = vadd.xlane.f32.xlu0 %v3408_v4 }
 0x1aa   : > { %805 = vadd.xlane.f32.xlu1 %v754_v28 }
 0x1ab   : > { %803 = vadd.xlane.f32.xlu0 %v753_v2 }
 0x1ae   : > { %801 = vadd.xlane.f32.xlu1 %v752_v5 }
 0x1af   : > { %799 = vadd.xlane.f32.xlu0 %v751_v7 }
 0x1b2   : > { %684 = vadd.xlane.f32.xlu1 %v3437_v20 }
 0x1b3   : > { %682 = vadd.xlane.f32.xlu0 %v3429_v15 }
 0x1b6   : > { %680 = vadd.xlane.f32.xlu1 %v3440_v23 }
 0x1b7   : > { %678 = vadd.xlane.f32.xlu0 %v3434_v18 }
 0x1ba   : > { %813 = vadd.xlane.f32.xlu1 %v758_v8 }
 0x1bb   : > { %811 = vadd.xlane.f32.xlu0 %v757_v12 }
 0x1be   : > { %809 = vadd.xlane.f32.xlu1 %v756_v13 }
 0x1bf   : > { %807 = vadd.xlane.f32.xlu0 %v755_v14 }
 0x1c2   : > { %692 = vadd.xlane.f32.xlu1 %v3461_v41 }
 0x1c3   : > { %690 = vadd.xlane.f32.xlu0 %v3450_v34 }
 0x1c6   : > { %688 = vadd.xlane.f32.xlu1 %v3465_v44 }
 0x1c7   : > { %686 = vadd.xlane.f32.xlu0 %v3457_v39 }
 0x1ca   : > { %821 = vadd.xlane.f32.xlu1 %v762_v16 }
 0x1cb   : > { %819 = vadd.xlane.f32.xlu0 %v761_v17 }
 0x1ce   : > { %817 = vadd.xlane.f32.xlu1 %v760_v19 }
 0x1cf   : > { %815 = vadd.xlane.f32.xlu0 %v759_v21 }
 0x1d2   : > { %700 = vadd.xlane.f32.xlu1 %v3488_v59 }
 0x1d3   : > { %698 = vadd.xlane.f32.xlu0 %v3480_v54 }
 0x1d6   : > { %696 = vadd.xlane.f32.xlu1 %v3491_v61 }
 0x1d7   : > { %694 = vadd.xlane.f32.xlu0 %v3485_v55 }
 0x1da   : > { %825 = vadd.xlane.f32.xlu1 %v764_v22 }
 0x1db   : > { %823 = vadd.xlane.f32.xlu0 %v763_v24 }
 0x1de   : > { %829 = vadd.xlane.f32.xlu1 %v766_v26 }
 0x1df   : > { %827 = vadd.xlane.f32.xlu0 %v765_v31 }
 0x1ef   : > { %v643_v33 = vpop.xlane.xlu1 %642 }
 0x1f0   : > { %v639_v36 = vpop.xlane.xlu0 %638  ;;  %v705_v40 = vmul.f32 0.0078125, %v643_v33 }
 0x1f1   : > { %v3545_v0 = vmul.f32 0.0078125, %v639_v36 }
 0x1f2   : > { %v865_v50 = vmul.f32 %v705_v40, %v705_v40 }
 0x1f3   : > { %v645_v42 = vpop.xlane.xlu1 %644  ;;  %v863_v17 = vmul.f32 %v3545_v0, %v3545_v0 }
 0x1f4   : > { %v706_v43 = vmul.f32 0.0078125, %v645_v42  ;;  %v772_v49 = vpop.xlane.xlu0 %771 }
 0x1f5   : > { %v833_v53 = vmul.f32 0.0078125, %v772_v49 }
 0x1f6   : > { %v866_v58 = vmul.f32 %v706_v43, %v706_v43 }
 0x1f7   : > { %v897_v56 = vsub.f32 %v833_v53, %v865_v50  ;;  %v774_v57 = vpop.xlane.xlu1 %773  ;;  %v1089_v53 = vsub.s32 1, %v3333_v25 }
 0x1f8   : > { %v834_v60 = vmul.f32 0.0078125, %v774_v57  ;;  %v641_v63 = vpop.xlane.xlu0 %640 }
 0x1f9   : > { %v929_v28 = vmax.f32 %v897_v56, 0.0  ;;  %v3547_v2 = vmul.f32 0.0078125, %v641_v63  ;;  %v961_v63 = vsub.f32 %v3345_v30, %v705_v40 }
 0x1fa   : > { %v898_v5 = vsub.f32 %v834_v60, %v866_v58 }
 0x1fb   : > { %v993_v7 = vadd.f32 1e-05, %v929_v28  ;;  %v864_v8 = vmul.f32 %v3547_v2, %v3547_v2  ;;  %v770_v12 = vpop.xlane.xlu1 %769 }
 0x1fc   : > { %v930_v13 = vmax.f32 %v898_v5, 0.0  ;;  %v832_v14 = vmul.f32 0.0078125, %v770_v12  ;;  %v768_v16 = vpop.xlane.xlu0 %767  ;;  %v3560_v5 = vrot.slane %v3339_v27, %v1089_v53 }
 0x1fd   : > { %2792 = vrsqrt.f32 %v993_v7  ;;  %v831_v19 = vmul.f32 0.0078125, %v768_v16  ;;  %v1125_v7 = vsub.s32 2, %v3333_v25 }
 0x1fe   : > { %v994_v21 = vadd.f32 1e-05, %v930_v13  ;;  %v896_v22 = vsub.f32 %v832_v14, %v864_v8  ;;  %v962_v8 = vsub.f32 %v3353_v35, %v706_v43 }
 0x1ff   : > { %v895_v24 = vsub.f32 %v831_v19, %v863_v17  ;;  %v653_v26 = vpop.xlane.xlu1 %652  ;;  %v3573_v35 = vrot.slane %v3339_v27, %v1125_v7  ;;  %v959_v27 = vsub.f32 %v3348_v32, %v3545_v0 }
 0x200   : > { %2794 = vrsqrt.f32 %v994_v21  ;;  %v928_v31 = vmax.f32 %v896_v22, 0.0  ;;  %v651_v33 = vpop.xlane.xlu0 %650  ;;  %v3554_v56 = vmul.f32 0.0078125, %v653_v26 }
 0x201   : > { %v927_v36 = vmax.f32 %v895_v24, 0.0  ;;  %v3556_v58 = vmul.f32 0.0078125, %v651_v33 }
 0x202   : > { %v992_v42 = vadd.f32 1e-05, %v928_v31  ;;  %v870_v12 = vmul.f32 %v3554_v56, %v3554_v56  ;;  %v960_v31 = vsub.f32 %v3359_v38, %v3547_v2 }
 0x203   : > { %v991_v49 = vadd.f32 1e-05, %v927_v36  ;;  %v649_v50 = vpop.xlane.xlu1 %648  ;;  %v869_v17 = vmul.f32 %v3556_v58, %v3556_v58 }
 0x204   : > { %2796 = vrsqrt.f32 %v992_v42  ;;  %v647_v57 = vpop.xlane.xlu0 %646  ;;  %v3566_v13 = vmul.f32 0.0078125, %v649_v50 }
 0x205   : > { %2798 = vrsqrt.f32 %v991_v49  ;;  %v3570_v19 = vmul.f32 0.0078125, %v647_v57 }
 0x206   : > { %v868_v33 = vmul.f32 %v3566_v13, %v3566_v13 }
 0x207   : > { %v2793_v60 = vpop.eup %2792  ;;  %v782_v28 = vpop.xlane.xlu1 %781  ;;  %v867_v50 = vmul.f32 %v3570_v19, %v3570_v19 }
 0x208   : > { %v838_v14 = vmul.f32 0.0078125, %v782_v28  ;;  %v780_v16 = vpop.xlane.xlu0 %779  ;;  %v1057_v40 = vmul.f32 %v2793_v60, %v961_v63 }
 0x209   : > { %v837_v30 = vmul.f32 0.0078125, %v780_v16 }
 0x20a   : > { %v2795_v21 = vpop.eup %2794  ;;  %v902_v22 = vsub.f32 %v838_v14, %v870_v12  ;;  %v1093_v60 = vmul.f32 %v3560_v5, %v1057_v40 }
 0x20b   : > { %v901_v24 = vsub.f32 %v837_v30, %v869_v17  ;;  %v778_v26 = vpop.xlane.xlu1 %777  ;;  %v1058_v43 = vmul.f32 %v2795_v21, %v962_v8 }
 0x20c   : > { %v934_v36 = vmax.f32 %v902_v22, 0.0  ;;  %v836_v42 = vmul.f32 0.0078125, %v778_v26  ;;  %v776_v49 = vpop.xlane.xlu0 %775 }
 0x20d   : > { %v933_v53 = vmax.f32 %v901_v24, 0.0  ;;  %v835_v57 = vmul.f32 0.0078125, %v776_v49  ;;  %v1094_v38 = vmul.f32 %v3560_v5, %v1058_v43  ;;  %v1129_v24 = vadd.f32 %v3573_v35, %v1093_v60 }
 0x20e   : > { %v2797_v63 = vpop.eup %2796  ;;  %v998_v28 = vadd.f32 1e-05, %v934_v36  ;;  %v900_v7 = vsub.f32 %v836_v42, %v868_v33  ;;  %v966_v49 = vsub.f32 %v3369_v45, %v3554_v56 }
 0x20f   : > { %v2799_v2 = vpop.eup %2798  ;;  %v997_v8 = vadd.f32 1e-05, %v933_v53  ;;  %v899_v12 = vsub.f32 %v835_v57, %v867_v50  ;;  %v661_v14 = vpop.xlane.xlu1 %660  ;;  %v1056_v16 = vmul.f32 %v2797_v63, %v960_v31  ;;  %v1130_v26 = vadd.f32 %v3573_v35, %v1094_v38 }
 0x210   : > { %2800 = vrsqrt.f32 %v998_v28  ;;  %v932_v17 = vmax.f32 %v900_v7, 0.0  ;;  %v659_v30 = vpop.xlane.xlu0 %658  ;;  %v1055_v21 = vmul.f32 %v2799_v2, %v959_v27  ;;  %v3589_v33 = vmul.f32 0.0078125, %v661_v14 }
 0x211   : > { %2802 = vrsqrt.f32 %v997_v8  ;;  %v931_v22 = vmax.f32 %v899_v12, 0.0  ;;  %v1092_v40 = vmul.f32 %v3560_v5, %v1056_v16  ;;  %v3591_v36 = vmul.f32 0.0078125, %v659_v30 }
 0x212   : > { %v996_v32 = vadd.f32 1e-05, %v932_v17  ;;  %v1091_v0 = vmul.f32 %v3560_v5, %v1055_v21  ;;  %v1193_v60 = vmul.f32 0.01, %v1129_v24  ;;  %vm1161_vm2 = vcmp.gt.f32.partialorder %v1129_v24, 0.0 }
 0x213   : > { %v995_v43 = vadd.f32 1e-05, %v931_v22  ;;  %v657_v31 = vpop.xlane.xlu1 %656  ;;  %v1128_v42 = vadd.f32 %v3573_v35, %v1092_v40  ;;  %vm1162_vm3 = vcmp.gt.f32.partialorder %v1130_v26, 0.0  ;;  %v874_v27 = vmul.f32 %v3589_v33, %v3589_v33 }
 0x214   : > { %2804 = vrsqrt.f32 %v996_v32  ;;  %v655_v50 = vpop.xlane.xlu0 %654  ;;  %v1127_v53 = vadd.f32 %v3573_v35, %v1091_v0  ;;  %v873_v28 = vmul.f32 %v3591_v36, %v3591_v36  ;;  %v1194_v56 = vmul.f32 0.01, %v1130_v26 }
 0x215   : > { %2806 = vrsqrt.f32 %v995_v43  ;;  %vm1160_vm0 = vcmp.gt.f32.partialorder %v1128_v42, 0.0  ;;  %v1192_v57 = vmul.f32 0.01, %v1128_v42  ;;  %v3601_v38 = vmul.f32 0.0078125, %v657_v31 }
 0x216   : > { %vm1159_vm1 = vcmp.gt.f32.partialorder %v1127_v53, 0.0  ;;  %v1191_v63 = vmul.f32 0.01, %v1127_v53  ;;  %v3603_v2 = vmul.f32 0.0078125, %v655_v50  ;;  %v1225_v30 = vsel %vm1161_vm2, %v1129_v24, %v1193_v60 }
 0x217   : > { %v790_v7 = vpop.xlane.xlu1 %789  ;;  %v1224_v45 = vsel %vm1160_vm0, %v1128_v42, %v1192_v57  ;;  %v1226_v21 = vsel %vm1162_vm3, %v1130_v26, %v1194_v56  ;;  %v965_v40 = vsub.f32 %v3372_v48, %v3556_v58  ;;  %v872_v50 = vmul.f32 %v3601_v38, %v3601_v38 }
 0x218   : > { %v842_v8 = vmul.f32 0.0078125, %v790_v7  ;;  %v788_v12 = vpop.xlane.xlu0 %787  ;;  %v1223_v14 = vsel %vm1159_vm1, %v1127_v53, %v1191_v63  ;;  %v1256_v0 = vpack.c.bf16 %v1226_v21, %v1225_v30  ;;  %v964_v26 = vsub.f32 %v3377_v51, %v3566_v13 }
 0x219   : > { %v841_v16 = vmul.f32 0.0078125, %v788_v12  ;;  %v1255_v17 = vpack.c.bf16 %v1224_v45, %v1223_v14  ;;  %v871_v48 = vmul.f32 %v3603_v2, %v3603_v2 }
 0x21a   : > { %v2801_v22 = vpop.eup %2800  ;;  %v906_v32 = vsub.f32 %v842_v8, %v874_v27 }
 0x21b   : > { %v2803_v43 = vpop.eup %2802  ;;  %v905_v42 = vsub.f32 %v841_v16, %v873_v28  ;;  %v786_v57 = vpop.xlane.xlu1 %785  ;;  %2641 = vmatprep.mubr.bf16.mxu1 %v1255_v17  ;;  %v1062_v31 = vmul.f32 %v2801_v22, %v966_v49  ;;  %v963_v49 = vsub.f32 %v3380_v52, %v3570_v19 }
 0x21c   : > { %v938_v7 = vmax.f32 %v906_v32, 0.0  ;;  %v840_v53 = vmul.f32 0.0078125, %v786_v57  ;;  %2642 = vmatmul.mubr.bf16.vlgmr.msra.gmra.mrb[0].mxu1 %v1256_v0  ;;  %v784_v63 = vpop.xlane.xlu0 %783  ;;  %v1061_v24 = vmul.f32 %v2803_v43, %v965_v40 }
 0x21d   : > { %v937_v58 = vmax.f32 %v905_v42, 0.0  ;;  %v839_v60 = vmul.f32 0.0078125, %v784_v63  ;;  %v1098_v17 = vmul.f32 %v3560_v5, %v1062_v31 }
 0x21e   : > { %v2805_v27 = vpop.eup %2804  ;;  %v1002_v28 = vadd.f32 1e-05, %v938_v7  ;;  %v904_v45 = vsub.f32 %v840_v53, %v872_v50  ;;  %v1097_v21 = vmul.f32 %v3560_v5, %v1061_v24  ;;  %v970_v24 = vsub.f32 %v3399_v62, %v3589_v33 }
 0x21f   : > { %v2807_v56 = vpop.eup %2806  ;;  %v1001_v8 = vadd.f32 1e-05, %v937_v58  ;;  %v903_v12 = vsub.f32 %v839_v60, %v871_v48  ;;  %v669_v14 = vpop.xlane.xlu1 %668  ;;  %v1060_v16 = vmul.f32 %v2805_v27, %v964_v26  ;;  %v1134_v53 = vadd.f32 %v3573_v35, %v1098_v17 }
 0x220   : > { %2808 = vrsqrt.f32 %v1002_v28  ;;  %v936_v51 = vmax.f32 %v904_v45, 0.0  ;;  %v667_v13 = vpop.xlane.xlu0 %666  ;;  %v1059_v30 = vmul.f32 %v2807_v56, %v963_v49  ;;  %v3618_v19 = vmul.f32 0.0078125, %v669_v14 }
 0x221   : > { %2810 = vrsqrt.f32 %v1001_v8  ;;  %v935_v22 = vmax.f32 %v903_v12, 0.0  ;;  %v1096_v40 = vmul.f32 %v3560_v5, %v1060_v16  ;;  %v3621_v43 = vmul.f32 0.0078125, %v667_v13 }
 0x222   : > { %v1000_v52 = vadd.f32 1e-05, %v936_v51  ;;  %v1095_v32 = vmul.f32 %v3560_v5, %v1059_v30  ;;  %v1133_v7 = vadd.f32 %v3573_v35, %v1097_v21  ;;  %v878_v26 = vmul.f32 %v3618_v19, %v3618_v19 }
 0x223   : > { %v999_v0 = vadd.f32 1e-05, %v935_v22  ;;  %v665_v42 = vpop.xlane.xlu1 %664  ;;  %v1132_v57 = vadd.f32 %v3573_v35, %v1096_v40  ;;  %v877_v58 = vmul.f32 %v3621_v43, %v3621_v43  ;;  %vm1166_vm7 = vcmp.gt.f32.partialorder %v1134_v53, 0.0 }
 0x224   : > { %2812 = vrsqrt.f32 %v1000_v52  ;;  %v663_v31 = vpop.xlane.xlu0 %662  ;;  %v1131_v50 = vadd.f32 %v3573_v35, %v1095_v32  ;;  %v3633_v60 = vmul.f32 0.0078125, %v665_v42  ;;  %vm1165_vm6 = vcmp.gt.f32.partialorder %v1133_v7, 0.0 }
 0x225   : > { %2814 = vrsqrt.f32 %v999_v0  ;;  %vm1164_vm4 = vcmp.gt.f32.partialorder %v1132_v57, 0.0  ;;  %v1196_v63 = vmul.f32 0.01, %v1132_v57  ;;  %v1197_v8 = vmul.f32 0.01, %v1133_v7 }
 0x226   : > { %vm1163_vm5 = vcmp.gt.f32.partialorder %v1131_v50, 0.0  ;;  %v1195_v48 = vmul.f32 0.01, %v1131_v50  ;;  %v3635_v12 = vmul.f32 0.0078125, %v663_v31  ;;  %v1198_v14 = vmul.f32 0.01, %v1134_v53 }
 0x227   : > { %v798_v27 = vpop.xlane.xlu1 %797  ;;  %v1228_v49 = vsel %vm1164_vm4, %v1132_v57, %v1196_v63  ;;  %v969_v17 = vsub.f32 %v3405_v3, %v3591_v36  ;;  %v1229_v13 = vsel %vm1165_vm6, %v1133_v7, %v1197_v8  ;;  %v876_v21 = vmul.f32 %v3633_v60, %v3633_v60 }
 0x228   : > { %v846_v28 = vmul.f32 0.0078125, %v798_v27  ;;  %v796_v45 = vpop.xlane.xlu0 %795  ;;  %v1227_v56 = vsel %vm1163_vm5, %v1131_v50, %v1195_v48  ;;  %v1230_v52 = vsel %vm1166_vm7, %v1134_v53, %v1198_v14  ;;  %v968_v63 = vsub.f32 %v3419_v10, %v3601_v38 }
 0x229   : > { %v845_v62 = vmul.f32 0.0078125, %v796_v45  ;;  %v1257_v33 = vpack.c.bf16 %v1228_v49, %v1227_v56  ;;  %v1258_v57 = vpack.c.bf16 %v1230_v52, %v1229_v13  ;;  %v875_v3 = vmul.f32 %v3635_v12, %v3635_v12 }
 0x22a   : > { %v2809_v16 = vpop.eup %2808  ;;  %v910_v51 = vsub.f32 %v846_v28, %v878_v26  ;;  %v967_v48 = vsub.f32 %v3422_v11, %v3603_v2 }
 0x22b   : > { %v2811_v30 = vpop.eup %2810  ;;  %v909_v22 = vsub.f32 %v845_v62, %v877_v58  ;;  %v794_v40 = vpop.xlane.xlu1 %793  ;;  %2645 = vmatprep.mubr.bf16.mxu1 %v1257_v33  ;;  %v1066_v32 = vmul.f32 %v2809_v16, %v970_v24 }
 0x22c   : > { %v942_v0 = vmax.f32 %v910_v51, 0.0  ;;  %v844_v42 = vmul.f32 0.0078125, %v794_v40  ;;  %v792_v31 = vpop.xlane.xlu0 %791  ;;  %v1065_v50 = vmul.f32 %v2811_v30, %v969_v17  ;;  %2646 = vmatmul.mubr.bf16.gmra.mrb[4].mxu1 %v1258_v57 }
 0x22d   : > { %v941_v36 = vmax.f32 %v909_v22, 0.0  ;;  %v843_v7 = vmul.f32 0.0078125, %v792_v31  ;;  %v1102_v56 = vmul.f32 %v3560_v5, %v1066_v32 }
 0x22e   : > { %v2813_v26 = vpop.eup %2812  ;;  %v1006_v58 = vadd.f32 1e-05, %v942_v0  ;;  %v908_v53 = vsub.f32 %v844_v42, %v876_v21  ;;  %v1101_v62 = vmul.f32 %v3560_v5, %v1065_v50  ;;  %v974_v0 = vsub.f32 %v3447_v29, %v3618_v19 }
 0x22f   : > { %v2815_v24 = vpop.eup %2814  ;;  %v1005_v27 = vadd.f32 1e-05, %v941_v36  ;;  %v907_v49 = vsub.f32 %v843_v7, %v875_v3  ;;  %v677_v28 = vpop.xlane.xlu1 %676  ;;  %v1064_v45 = vmul.f32 %v2813_v26, %v968_v63  ;;  %v1138_v52 = vadd.f32 %v3573_v35, %v1102_v56 }
 0x230   : > { %2816 = vrsqrt.f32 %v1006_v58  ;;  %v940_v10 = vmax.f32 %v908_v53, 0.0  ;;  %v675_v38 = vpop.xlane.xlu0 %674  ;;  %v1063_v8 = vmul.f32 %v2815_v24, %v967_v48  ;;  %v3650_v14 = vmul.f32 0.0078125, %v677_v28 }
 0x231   : > { %2818 = vrsqrt.f32 %v1005_v27  ;;  %v939_v33 = vmax.f32 %v907_v49, 0.0  ;;  %v1100_v11 = vmul.f32 %v3560_v5, %v1064_v45  ;;  %v3653_v51 = vmul.f32 0.0078125, %v675_v38 }
 0x232   : > { %v1004_v2 = vadd.f32 1e-05, %v940_v10  ;;  %v1099_v16 = vmul.f32 %v3560_v5, %v1063_v8  ;;  %v1137_v40 = vadd.f32 %v3573_v35, %v1101_v62  ;;  %v882_v42 = vmul.f32 %v3650_v14, %v3650_v14 }
 0x233   : > { %v1003_v17 = vadd.f32 1e-05, %v939_v33  ;;  %v673_v13 = vpop.xlane.xlu1 %672  ;;  %v1136_v30 = vadd.f32 %v3573_v35, %v1100_v11  ;;  %v881_v31 = vmul.f32 %v3653_v51, %v3653_v51  ;;  %vm1170_vm11 = vcmp.gt.f32.partialorder %v1138_v52, 0.0 }
 0x234   : > { %2820 = vrsqrt.f32 %v1004_v2  ;;  %v671_v21 = vpop.xlane.xlu0 %670  ;;  %v1135_v22 = vadd.f32 %v3573_v35, %v1099_v16  ;;  %v3665_v50 = vmul.f32 0.0078125, %v673_v13  ;;  %vm1169_vm10 = vcmp.gt.f32.partialorder %v1137_v40, 0.0 }
 0x235   : > { %2822 = vrsqrt.f32 %v1003_v17  ;;  %vm1168_vm8 = vcmp.gt.f32.partialorder %v1136_v30, 0.0  ;;  %v1200_v32 = vmul.f32 0.01, %v1136_v30  ;;  %v1201_v48 = vmul.f32 0.01, %v1137_v40 }
 0x236   : > { %vm1167_vm9 = vcmp.gt.f32.partialorder %v1135_v22, 0.0  ;;  %v1199_v57 = vmul.f32 0.01, %v1135_v22  ;;  %v3667_v58 = vmul.f32 0.0078125, %v671_v21  ;;  %v1202_v53 = vmul.f32 0.01, %v1138_v52 }
 0x237   : > { %v806_v63 = vpop.xlane.xlu1 %805  ;;  %v1232_v3 = vsel %vm1168_vm8, %v1136_v30, %v1200_v32  ;;  %v973_v27 = vsub.f32 %v3454_v37, %v3621_v43  ;;  %v1233_v28 = vsel %vm1169_vm10, %v1137_v40, %v1201_v48  ;;  %v880_v56 = vmul.f32 %v3665_v50, %v3665_v50 }
 0x238   : > { %v850_v36 = vmul.f32 0.0078125, %v806_v63  ;;  %v804_v7 = vpop.xlane.xlu0 %803  ;;  %v1231_v26 = vsel %vm1167_vm9, %v1135_v22, %v1199_v57  ;;  %v1234_v8 = vsel %vm1170_vm11, %v1138_v52, %v1202_v53  ;;  %v972_v13 = vsub.f32 %v3469_v46, %v3633_v60 }
 0x239   : > { %v849_v29 = vmul.f32 0.0078125, %v804_v7  ;;  %v1259_v19 = vpack.c.bf16 %v1232_v3, %v1231_v26  ;;  %v1260_v2 = vpack.c.bf16 %v1234_v8, %v1233_v28  ;;  %v879_v37 = vmul.f32 %v3667_v58, %v3667_v58 }
 0x23a   : > { %v2817_v24 = vpop.eup %2816  ;;  %v914_v49 = vsub.f32 %v850_v36, %v882_v42  ;;  %v971_v22 = vsub.f32 %v3473_v47, %v3635_v12 }
 0x23b   : > { %v2819_v45 = vpop.eup %2818  ;;  %v913_v10 = vsub.f32 %v849_v29, %v881_v31  ;;  %v802_v38 = vpop.xlane.xlu1 %801  ;;  %2649 = vmatprep.mubr.bf16.mxu1 %v1259_v19  ;;  %v1070_v62 = vmul.f32 %v2817_v24, %v974_v0 }
 0x23c   : > { %v946_v33 = vmax.f32 %v914_v49, 0.0  ;;  %v848_v11 = vmul.f32 0.0078125, %v802_v38  ;;  %v800_v16 = vpop.xlane.xlu0 %799  ;;  %v1069_v17 = vmul.f32 %v2819_v45, %v973_v27  ;;  %2650 = vmatmul.mubr.bf16.gmra.mrb[8].mxu1 %v1260_v2 }
 0x23d   : > { %v945_v43 = vmax.f32 %v913_v10, 0.0  ;;  %v847_v30 = vmul.f32 0.0078125, %v800_v16  ;;  %v1106_v63 = vmul.f32 %v3560_v5, %v1070_v62  ;;  %v978_v10 = vsub.f32 %v3412_v6, %v3650_v14 }
 0x23e   : > { %v2821_v21 = vpop.eup %2820  ;;  %v1010_v40 = vadd.f32 1e-05, %v946_v33  ;;  %v912_v52 = vsub.f32 %v848_v11, %v880_v56  ;;  %v1105_v36 = vmul.f32 %v3560_v5, %v1069_v17 }
 0x23f   : > { %v2823_v32 = vpop.eup %2822  ;;  %v1009_v0 = vadd.f32 1e-05, %v945_v43  ;;  %v911_v42 = vsub.f32 %v847_v30, %v879_v37  ;;  %v685_v57 = vpop.xlane.xlu1 %684  ;;  %v1068_v31 = vmul.f32 %v2821_v21, %v972_v13  ;;  %v1142_v45 = vadd.f32 %v3573_v35, %v1106_v63 }
 0x240   : > { %2824 = vrsqrt.f32 %v1010_v40  ;;  %v944_v46 = vmax.f32 %v912_v52, 0.0  ;;  %v683_v60 = vpop.xlane.xlu0 %682  ;;  %v1067_v3 = vmul.f32 %v2823_v32, %v971_v22  ;;  %v3682_v26 = vmul.f32 0.0078125, %v685_v57 }
 0x241   : > { %2826 = vrsqrt.f32 %v1009_v0  ;;  %v943_v7 = vmax.f32 %v911_v42, 0.0  ;;  %v1104_v47 = vmul.f32 %v3560_v5, %v1068_v31  ;;  %v3685_v19 = vmul.f32 0.0078125, %v683_v60 }
 0x242   : > { %v1008_v12 = vadd.f32 1e-05, %v944_v46  ;;  %v1103_v48 = vmul.f32 %v3560_v5, %v1067_v3  ;;  %v1141_v28 = vadd.f32 %v3573_v35, %v1105_v36  ;;  %v886_v38 = vmul.f32 %v3682_v26, %v3682_v26 }
 0x243   : > { %v1007_v29 = vadd.f32 1e-05, %v943_v7  ;;  %v681_v53 = vpop.xlane.xlu1 %680  ;;  %v1140_v24 = vadd.f32 %v3573_v35, %v1104_v47  ;;  %v885_v62 = vmul.f32 %v3685_v19, %v3685_v19  ;;  %vm1174_vm15 = vcmp.gt.f32.partialorder %v1142_v45, 0.0 }
 0x244   : > { %2828 = vrsqrt.f32 %v1008_v12  ;;  %v679_v27 = vpop.xlane.xlu0 %678  ;;  %v1139_v49 = vadd.f32 %v3573_v35, %v1103_v48  ;;  %v3697_v33 = vmul.f32 0.0078125, %v681_v53  ;;  %vm1173_vm14 = vcmp.gt.f32.partialorder %v1141_v28, 0.0 }
 0x245   : > { %2830 = vrsqrt.f32 %v1007_v29  ;;  %vm1172_vm12 = vcmp.gt.f32.partialorder %v1140_v24, 0.0  ;;  %v1204_v56 = vmul.f32 0.01, %v1140_v24  ;;  %v1205_v37 = vmul.f32 0.01, %v1141_v28 }
 0x246   : > { %vm1171_vm13 = vcmp.gt.f32.partialorder %v1139_v49, 0.0  ;;  %v1203_v8 = vmul.f32 0.01, %v1139_v49  ;;  %v3699_v43 = vmul.f32 0.0078125, %v679_v27  ;;  %v1206_v30 = vmul.f32 0.01, %v1142_v45 }
 0x247   : > { %v814_v11 = vpop.xlane.xlu1 %813  ;;  %v1236_v2 = vsel %vm1172_vm12, %v1140_v24, %v1204_v56  ;;  %v977_v22 = vsub.f32 %v3402_v1, %v3653_v51  ;;  %v1237_v52 = vsel %vm1173_vm14, %v1141_v28, %v1205_v37  ;;  %v884_v0 = vmul.f32 %v3697_v33, %v3697_v33 }
 0x248   : > { %v854_v16 = vmul.f32 0.0078125, %v814_v11  ;;  %v812_v17 = vpop.xlane.xlu0 %811  ;;  %v1235_v13 = vsel %vm1171_vm13, %v1139_v49, %v1203_v8  ;;  %v1238_v31 = vsel %vm1174_vm15, %v1142_v45, %v1206_v30  ;;  %v976_v47 = vsub.f32 %v3416_v9, %v3665_v50 }
 0x249   : > { %v853_v6 = vmul.f32 0.0078125, %v812_v17  ;;  %v1261_v14 = vpack.c.bf16 %v1236_v2, %v1235_v13  ;;  %v1262_v3 = vpack.c.bf16 %v1238_v31, %v1237_v52  ;;  %v883_v1 = vmul.f32 %v3699_v43, %v3699_v43 }
 0x24a   : > { %v2825_v21 = vpop.eup %2824  ;;  %v918_v40 = vsub.f32 %v854_v16, %v886_v38  ;;  %v975_v29 = vsub.f32 %v3408_v4, %v3667_v58 }
 0x24b   : > { %v2827_v32 = vpop.eup %2826  ;;  %v917_v42 = vsub.f32 %v853_v6, %v885_v62  ;;  %v810_v57 = vpop.xlane.xlu1 %809  ;;  %2653 = vmatprep.mubr.bf16.mxu1 %v1261_v14  ;;  %v1074_v63 = vmul.f32 %v2825_v21, %v978_v10 }
 0x24c   : > { %v950_v46 = vmax.f32 %v918_v40, 0.0  ;;  %v852_v60 = vmul.f32 0.0078125, %v810_v57  ;;  %v808_v36 = vpop.xlane.xlu0 %807  ;;  %v1073_v7 = vmul.f32 %v2827_v32, %v977_v22  ;;  %2654 = vmatmul.mubr.bf16.gmra.mrb[12].mxu1 %v1262_v3  ;;  %v982_v40 = vsub.f32 %v3437_v20, %v3682_v26 }
 0x24d   : > { %v949_v51 = vmax.f32 %v917_v42, 0.0  ;;  %v851_v12 = vmul.f32 0.0078125, %v808_v36  ;;  %v1110_v10 = vmul.f32 %v3560_v5, %v1074_v63 }
 0x24e   : > { %v2829_v48 = vpop.eup %2828  ;;  %v1014_v53 = vadd.f32 1e-05, %v950_v46  ;;  %v916_v24 = vsub.f32 %v852_v60, %v884_v0  ;;  %v1109_v8 = vmul.f32 %v3560_v5, %v1073_v7 }
 0x24f   : > { %v2831_v27 = vpop.eup %2830  ;;  %v1013_v49 = vadd.f32 1e-05, %v949_v51  ;;  %v915_v28 = vsub.f32 %v851_v12, %v883_v1  ;;  %v693_v45 = vpop.xlane.xlu1 %692  ;;  %v1072_v56 = vmul.f32 %v2829_v48, %v976_v47  ;;  %v1146_v21 = vadd.f32 %v3573_v35, %v1110_v10 }
 0x250   : > { %2832 = vrsqrt.f32 %v1014_v53  ;;  %v948_v9 = vmax.f32 %v916_v24, 0.0  ;;  %v691_v50 = vpop.xlane.xlu0 %690  ;;  %v1071_v38 = vmul.f32 %v2831_v27, %v975_v29  ;;  %v3714_v11 = vmul.f32 0.0078125, %v693_v45 }
 0x251   : > { %2834 = vrsqrt.f32 %v1013_v49  ;;  %v947_v62 = vmax.f32 %v915_v28, 0.0  ;;  %v1108_v4 = vmul.f32 %v3560_v5, %v1072_v56  ;;  %v3717_v17 = vmul.f32 0.0078125, %v691_v50 }
 0x252   : > { %v1012_v58 = vadd.f32 1e-05, %v948_v9  ;;  %v1107_v2 = vmul.f32 %v3560_v5, %v1071_v38  ;;  %v1145_v30 = vadd.f32 %v3573_v35, %v1109_v8  ;;  %v890_v52 = vmul.f32 %v3714_v11, %v3714_v11 }
 0x253   : > { %v1011_v16 = vadd.f32 1e-05, %v947_v62  ;;  %v689_v13 = vpop.xlane.xlu1 %688  ;;  %v1144_v37 = vadd.f32 %v3573_v35, %v1108_v4  ;;  %v889_v0 = vmul.f32 %v3717_v17, %v3717_v17  ;;  %vm1178_vm3 = vcmp.gt.f32.partialorder %v1146_v21, 0.0 }
 0x254   : > { %2836 = vrsqrt.f32 %v1012_v58  ;;  %v687_v6 = vpop.xlane.xlu0 %686  ;;  %v1143_v14 = vadd.f32 %v3573_v35, %v1107_v2  ;;  %v3729_v42 = vmul.f32 0.0078125, %v689_v13  ;;  %vm1177_vm2 = vcmp.gt.f32.partialorder %v1145_v30, 0.0 }
 0x255   : > { %2838 = vrsqrt.f32 %v1011_v16  ;;  %vm1176_vm0 = vcmp.gt.f32.partialorder %v1144_v37, 0.0  ;;  %v1208_v22 = vmul.f32 0.01, %v1144_v37  ;;  %v1209_v3 = vmul.f32 0.01, %v1145_v30 }
 0x256   : > { %vm1175_vm1 = vcmp.gt.f32.partialorder %v1143_v14, 0.0  ;;  %v1207_v32 = vmul.f32 0.01, %v1143_v14  ;;  %v3731_v36 = vmul.f32 0.0078125, %v687_v6  ;;  %v1210_v7 = vmul.f32 0.01, %v1146_v21 }
 0x257   : > { %v822_v57 = vpop.xlane.xlu1 %821  ;;  %v1240_v31 = vsel %vm1176_vm0, %v1144_v37, %v1208_v22  ;;  %v981_v1 = vsub.f32 %v3429_v15, %v3685_v19  ;;  %v1241_v12 = vsel %vm1177_vm2, %v1145_v30, %v1209_v3  ;;  %v888_v29 = vmul.f32 %v3729_v42, %v3729_v42 }
 0x258   : > { %v858_v63 = vmul.f32 0.0078125, %v822_v57  ;;  %v820_v46 = vpop.xlane.xlu0 %819  ;;  %v1239_v60 = vsel %vm1175_vm1, %v1143_v14, %v1207_v32  ;;  %v1242_v27 = vsel %vm1178_vm3, %v1146_v21, %v1210_v7  ;;  %v980_v50 = vsub.f32 %v3440_v23, %v3697_v33 }
 0x259   : > { %v857_v20 = vmul.f32 0.0078125, %v820_v46  ;;  %v1263_v26 = vpack.c.bf16 %v1240_v31, %v1239_v60  ;;  %v1264_v56 = vpack.c.bf16 %v1242_v27, %v1241_v12  ;;  %v887_v15 = vmul.f32 %v3731_v36, %v3731_v36 }
 0x25a   : > { %v2833_v47 = vpop.eup %2832  ;;  %v922_v51 = vsub.f32 %v858_v63, %v890_v52  ;;  %v979_v62 = vsub.f32 %v3434_v18, %v3699_v43 }
 0x25b   : > { %v2835_v48 = vpop.eup %2834  ;;  %v921_v53 = vsub.f32 %v857_v20, %v889_v0  ;;  %v818_v24 = vpop.xlane.xlu1 %817  ;;  %2657 = vmatprep.mubr.bf16.mxu1 %v1263_v26  ;;  %v1078_v49 = vmul.f32 %v2833_v47, %v982_v40  ;;  %v986_v26 = vsub.f32 %v3461_v41, %v3714_v11 }
 0x25c   : > { %v954_v28 = vmax.f32 %v922_v51, 0.0  ;;  %v856_v45 = vmul.f32 0.0078125, %v818_v24  ;;  %v816_v10 = vpop.xlane.xlu0 %815  ;;  %v1077_v9 = vmul.f32 %v2835_v48, %v981_v1  ;;  %2658 = vmatmul.mubr.bf16.gmra.mrb[16].mxu1 %v1264_v56  ;;  %v985_v56 = vsub.f32 %v3450_v34, %v3717_v17 }
 0x25d   : > { %v953_v19 = vmax.f32 %v921_v53, 0.0  ;;  %v855_v38 = vmul.f32 0.0078125, %v816_v10  ;;  %v1114_v14 = vmul.f32 %v3560_v5, %v1078_v49  ;;  %v984_v10 = vsub.f32 %v3465_v44, %v3729_v42 }
 0x25e   : > { %v2837_v8 = vpop.eup %2836  ;;  %v1018_v4 = vadd.f32 1e-05, %v954_v28  ;;  %v920_v58 = vsub.f32 %v856_v45, %v888_v29  ;;  %v1113_v21 = vmul.f32 %v3560_v5, %v1077_v9 }
 0x25f   : > { %v2839_v2 = vpop.eup %2838  ;;  %v1017_v16 = vadd.f32 1e-05, %v953_v19  ;;  %v919_v13 = vsub.f32 %v855_v38, %v887_v15  ;;  %v701_v37 = vpop.xlane.xlu1 %700  ;;  %v1076_v6 = vmul.f32 %v2837_v8, %v980_v50  ;;  %v1150_v57 = vadd.f32 %v3573_v35, %v1114_v14 }
 0x260   : > { %2840 = vrsqrt.f32 %v1018_v4  ;;  %v952_v23 = vmax.f32 %v920_v58, 0.0  ;;  %v699_v33 = vpop.xlane.xlu0 %698  ;;  %v1075_v30 = vmul.f32 %v2839_v2, %v979_v62  ;;  %v1149_v60 = vadd.f32 %v3573_v35, %v1113_v21 }
 0x261   : > { %2842 = vrsqrt.f32 %v1017_v16  ;;  %v951_v22 = vmax.f32 %v919_v13, 0.0  ;;  %v1112_v18 = vmul.f32 %v3560_v5, %v1076_v6  ;;  %v3757_v7 = vmul.f32 0.0078125, %v701_v37 }
 0x262   : > { %v1016_v43 = vadd.f32 1e-05, %v952_v23  ;;  %v1111_v40 = vmul.f32 %v3560_v5, %v1075_v30  ;;  %v3759_v1 = vmul.f32 0.0078125, %v699_v33  ;;  %vm1181_vm6 = vcmp.gt.f32.partialorder %v1149_v60, 0.0 }
 0x263   : > { %v1015_v52 = vadd.f32 1e-05, %v951_v22  ;;  %v697_v32 = vpop.xlane.xlu1 %696  ;;  %v1148_v0 = vadd.f32 %v3573_v35, %v1112_v18  ;;  %vm1182_vm7 = vcmp.gt.f32.partialorder %v1150_v57, 0.0  ;;  %v1213_v27 = vmul.f32 0.01, %v1149_v60 }
 0x264   : > { %2844 = vrsqrt.f32 %v1016_v43  ;;  %v3749_v31 = vmul.f32 0.0078125, %v697_v32  ;;  %v695_v63 = vpop.xlane.xlu0 %694  ;;  %v1147_v46 = vadd.f32 %v3573_v35, %v1111_v40  ;;  %v1214_v28 = vmul.f32 0.01, %v1150_v57 }
 0x265   : > { %2846 = vrsqrt.f32 %v1015_v52  ;;  %v3753_v3 = vmul.f32 0.0078125, %v695_v63  ;;  %vm1180_vm4 = vcmp.gt.f32.partialorder %v1148_v0, 0.0  ;;  %v1212_v20 = vmul.f32 0.01, %v1148_v0 }
 0x266   : > { %vm1179_vm5 = vcmp.gt.f32.partialorder %v1147_v46, 0.0  ;;  %v1211_v47 = vmul.f32 0.01, %v1147_v46  ;;  %v892_v51 = vmul.f32 %v3749_v31, %v3749_v31  ;;  %v1245_v50 = vsel %vm1181_vm6, %v1149_v60, %v1213_v27 }
 0x267   : > { %v826_v12 = vpop.xlane.xlu1 %825  ;;  %v1244_v48 = vsel %vm1180_vm4, %v1148_v0, %v1212_v20  ;;  %v891_v41 = vmul.f32 %v3753_v3, %v3753_v3  ;;  %v894_v19 = vmul.f32 %v3757_v7, %v3757_v7  ;;  %v1246_v62 = vsel %vm1182_vm7, %v1150_v57, %v1214_v28 }
 0x268   : > { %v860_v29 = vmul.f32 0.0078125, %v826_v12  ;;  %v824_v53 = vpop.xlane.xlu0 %823  ;;  %v1243_v24 = vsel %vm1179_vm5, %v1147_v46, %v1211_v47  ;;  %v1266_v16 = vpack.c.bf16 %v1246_v62, %v1245_v50  ;;  %v893_v44 = vmul.f32 %v3759_v1, %v3759_v1 }
 0x269   : > { %v859_v11 = vmul.f32 0.0078125, %v824_v53  ;;  %v1265_v49 = vpack.c.bf16 %v1244_v48, %v1243_v24  ;;  %v983_v14 = vsub.f32 %v3457_v39, %v3731_v36  ;;  %v988_v27 = vsub.f32 %v3491_v61, %v3749_v31 }
 0x26a   : > { %v2841_v45 = vpop.eup %2840  ;;  %v924_v9 = vsub.f32 %v860_v29, %v892_v51  ;;  %v989_v61 = vsub.f32 %v3480_v54, %v3759_v1 }
 0x26b   : > { %v2843_v15 = vpop.eup %2842  ;;  %v923_v38 = vsub.f32 %v859_v11, %v891_v41  ;;  %v830_v8 = vpop.xlane.xlu1 %829  ;;  %2661 = vmatprep.mubr.bf16.mxu1 %v1265_v49  ;;  %v1082_v4 = vmul.f32 %v2841_v45, %v986_v26  ;;  %v987_v49 = vsub.f32 %v3485_v55, %v3753_v3 }
 0x26c   : > { %v956_v58 = vmax.f32 %v924_v9, 0.0  ;;  %v862_v2 = vmul.f32 0.0078125, %v830_v8  ;;  %v828_v13 = vpop.xlane.xlu0 %827  ;;  %v1081_v34 = vmul.f32 %v2843_v15, %v985_v56  ;;  %2662 = vmatmul.mubr.bf16.gmra.mrb[20].mxu1 %v1266_v16  ;;  %v990_v9 = vsub.f32 %v3488_v59, %v3757_v7 }
 0x26d   : > { %v955_v17 = vmax.f32 %v923_v38, 0.0  ;;  %v861_v42 = vmul.f32 0.0078125, %v828_v13  ;;  %v1118_v37 = vmul.f32 %v3560_v5, %v1082_v4 }
 0x26e   : > { %v2845_v6 = vpop.eup %2844  ;;  %v1020_v23 = vadd.f32 1e-05, %v956_v58  ;;  %v926_v33 = vsub.f32 %v862_v2, %v894_v19  ;;  %v1117_v30 = vmul.f32 %v3560_v5, %v1081_v34 }
 0x26f   : > { %v2847_v21 = vpop.eup %2846  ;;  %v1019_v22 = vadd.f32 1e-05, %v955_v17  ;;  %v925_v18 = vsub.f32 %v861_v42, %v893_v44  ;;  %v1080_v43 = vmul.f32 %v2845_v6, %v984_v10  ;;  %v1154_v40 = vadd.f32 %v3573_v35, %v1118_v37 }
 0x270   : > { %2848 = vrsqrt.f32 %v1020_v23  ;;  %v958_v52 = vmax.f32 %v926_v33, 0.0  ;;  %v1079_v32 = vmul.f32 %v2847_v21, %v983_v14  ;;  %v1153_v0 = vadd.f32 %v3573_v35, %v1117_v30 }
 0x271   : > { %2850 = vrsqrt.f32 %v1019_v22  ;;  %v957_v57 = vmax.f32 %v925_v18, 0.0  ;;  %v1116_v39 = vmul.f32 %v3560_v5, %v1080_v43  ;;  %v1218_v26 = vmul.f32 0.01, %v1154_v40 }
 0x272   : > { %v1022_v36 = vadd.f32 1e-05, %v958_v52  ;;  %v1115_v63 = vmul.f32 %v3560_v5, %v1079_v32  ;;  %v1217_v20 = vmul.f32 0.01, %v1153_v0  ;;  %vm1185_vm8 = vcmp.gt.f32.partialorder %v1153_v0, 0.0 }
 0x273   : > { %v1021_v46 = vadd.f32 1e-05, %v957_v57  ;;  %v1152_v60 = vadd.f32 %v3573_v35, %v1116_v39  ;;  %vm1186_vm9 = vcmp.gt.f32.partialorder %v1154_v40, 0.0  ;;  %v1289_v37 = vsub.s32 3, %v3333_v25 }
 0x274   : > { %2852 = vrsqrt.f32 %v1022_v36  ;;  %v1151_v47 = vadd.f32 %v3573_v35, %v1115_v63  ;;  %v1249_v29 = vsel %vm1185_vm8, %v1153_v0, %v1217_v20  ;;  %v1250_v53 = vsel %vm1186_vm9, %v1154_v40, %v1218_v26 }
 0x275   : > { %2854 = vrsqrt.f32 %v1021_v46  ;;  %vm1184_vm10 = vcmp.gt.f32.partialorder %v1152_v60, 0.0  ;;  %v1216_v51 = vmul.f32 0.01, %v1152_v60  ;;  %v1268_v28 = vpack.c.bf16 %v1250_v53, %v1249_v29 }
 0x276   : > { %vm1183_vm11 = vcmp.gt.f32.partialorder %v1151_v47, 0.0  ;;  %v1215_v12 = vmul.f32 0.01, %v1151_v47 }
 0x277   : > { %v1248_v48 = vsel %vm1184_vm10, %v1152_v60, %v1216_v51 }
 0x278   : > { %v1247_v24 = vsel %vm1183_vm11, %v1151_v47, %v1215_v12 }
 0x279   : > { %v1267_v41 = vpack.c.bf16 %v1248_v48, %v1247_v24 }
 0x27a   : > { %v2849_v11 = vpop.eup %2848 }
 0x27b   : > { %v2851_v45 = vpop.eup %2850  ;;  %2665 = vmatprep.mubr.bf16.mxu1 %v1267_v41  ;;  %v1084_v56 = vmul.f32 %v2849_v11, %v988_v27 }
 0x27c   : > { %2666 = vmatmul.mubr.bf16.gmra.mrb[24].mxu1 %v1268_v28  ;;  %v1083_v10 = vmul.f32 %v2851_v45, %v987_v49 }
 0x27d   : > { %v1120_v50 = vmul.f32 %v3560_v5, %v1084_v56 }
 0x27e   : > { %v2853_v15 = vpop.eup %2852  ;;  %v1119_v31 = vmul.f32 %v3560_v5, %v1083_v10 }
 0x27f   : > { %v2855_v19 = vpop.eup %2854  ;;  %v1156_v55 = vadd.f32 %v3573_v35, %v1120_v50  ;;  %v1086_v3 = vmul.f32 %v2853_v15, %v990_v9 }
 0x280   : > { %v1155_v38 = vadd.f32 %v3573_v35, %v1119_v31  ;;  %v1085_v8 = vmul.f32 %v2855_v19, %v989_v61 }
 0x281   : > { %vm1188_vm12 = vcmp.gt.f32.partialorder %v1156_v55, 0.0  ;;  %v1220_v62 = vmul.f32 0.01, %v1156_v55  ;;  %v1122_v4 = vmul.f32 %v3560_v5, %v1086_v3 }
 0x282   : > { %vm1187_vm13 = vcmp.gt.f32.partialorder %v1155_v38, 0.0  ;;  %v1219_v59 = vmul.f32 0.01, %v1155_v38  ;;  %v1121_v7 = vmul.f32 %v3560_v5, %v1085_v8  ;;  %v3804_v5 = vld [vmem:[%s4359_s3] sm:$0xff] }
 0x283   : > { %v1252_v58 = vsel %vm1188_vm12, %v1156_v55, %v1220_v62  ;;  %v1158_v54 = vadd.f32 %v3573_v35, %v1122_v4  ;;  %v3807_v6 = vrot.slane %v3804_v5, %v1289_v37 }
 0x284   : > { %v1251_v1 = vsel %vm1187_vm13, %v1155_v38, %v1219_v59  ;;  %v1157_v2 = vadd.f32 %v3573_v35, %v1121_v7 }
 0x285   : > { %v1269_v16 = vpack.c.bf16 %v1252_v58, %v1251_v1  ;;  %vm1190_vm14 = vcmp.gt.f32.partialorder %v1158_v54, 0.0  ;;  %v1222_v13 = vmul.f32 0.01, %v1158_v54 }
 0x286   : > { %vm1189_vm15 = vcmp.gt.f32.partialorder %v1157_v2, 0.0  ;;  %v1221_v34 = vmul.f32 0.01, %v1157_v2 }
 0x287   : > { %2669 = vmatprep.mubr.bf16.mxu1 %v1269_v16  ;;  %v1254_v44 = vsel %vm1190_vm14, %v1158_v54, %v1222_v13 }
 0x288   : > { %v1253_v17 = vsel %vm1189_vm15, %v1157_v2, %v1221_v34 }
 0x289   : > { %v1270_v42 = vpack.c.bf16 %v1254_v44, %v1253_v17 }
 0x28b   : > { %2670 = vmatmul.mubr.bf16.gmra.mrb[28].mxu1 %v1270_v42 }
 0x2ef   : > { %v2643_v35 = vpop.f32.mrb[0].mxu1 }
 0x2f0   : > { %v3810_v14 = vadd.f32 %v2643_v35, %v3807_v6  ;;  %v1373_v23 = vpop.f32.mrb[1].mxu1 }
 0x2f1   : > { %v2644_v33 = vpop.f32.mrb[2].mxu1  ;;  %v3817_v22 = vadd.f32 %v1373_v23, %v3807_v6 }
 0x2f2   : > { %v3813_v30 = vadd.f32 %v2644_v33, %v3807_v6  ;;  %1504 = vadd.xlane.f32.xlu0 %v3810_v14  ;;  %v1376_v21 = vpop.f32.mrb[3].mxu1  ;;  %v1598_v43 = vmul.f32 %v3810_v14, %v3810_v14 }
 0x2f3   : > { %v3821_v18 = vadd.f32 %v1376_v21, %v3807_v6  ;;  %v1596_v52 = vmul.f32 %v3817_v22, %v3817_v22 }
 0x2f4   : > { %1506 = vadd.xlane.f32.xlu1 %v3813_v30  ;;  %v1599_v40 = vmul.f32 %v3813_v30, %v3813_v30 }
 0x2f5   : > { %v1597_v32 = vmul.f32 %v3821_v18, %v3821_v18 }
 0x2f6   : > { %1500 = vadd.xlane.f32.xlu0 %v3817_v22 }
 0x2f8   : > { %1502 = vadd.xlane.f32.xlu1 %v3821_v18 }
 0x2fa   : > { %1632 = vadd.xlane.f32.xlu0 %v1598_v43 }
 0x2fc   : > { %1634 = vadd.xlane.f32.xlu1 %v1599_v40 }
 0x2fe   : > { %1628 = vadd.xlane.f32.xlu0 %v1596_v52 }
 0x2ff   : > { %v2647_v0 = vpop.f32.mrb[4].mxu1 }
 0x300   : > { %1630 = vadd.xlane.f32.xlu1 %v1597_v32  ;;  %v3834_v57 = vadd.f32 %v2647_v0, %v3807_v6  ;;  %v1389_v39 = vpop.f32.mrb[5].mxu1 }
 0x301   : > { %v2648_v36 = vpop.f32.mrb[6].mxu1  ;;  %v3841_v60 = vadd.f32 %v1389_v39, %v3807_v6 }
 0x302   : > { %v3837_v63 = vadd.f32 %v2648_v36, %v3807_v6  ;;  %1512 = vadd.xlane.f32.xlu0 %v3834_v57  ;;  %v1392_v46 = vpop.f32.mrb[7].mxu1  ;;  %v1602_v26 = vmul.f32 %v3834_v57, %v3834_v57 }
 0x303   : > { %v3845_v20 = vadd.f32 %v1392_v46, %v3807_v6  ;;  %v1600_v51 = vmul.f32 %v3841_v60, %v3841_v60 }
 0x304   : > { %1514 = vadd.xlane.f32.xlu1 %v3837_v63  ;;  %v1603_v47 = vmul.f32 %v3837_v63, %v3837_v63 }
 0x305   : > { %v1601_v12 = vmul.f32 %v3845_v20, %v3845_v20 }
 0x306   : > { %1508 = vadd.xlane.f32.xlu0 %v3841_v60 }
 0x308   : > { %1510 = vadd.xlane.f32.xlu1 %v3845_v20 }
 0x30a   : > { %1640 = vadd.xlane.f32.xlu0 %v1602_v26 }
 0x30c   : > { %1642 = vadd.xlane.f32.xlu1 %v1603_v47 }
 0x30e   : > { %1636 = vadd.xlane.f32.xlu0 %v1600_v51 }
 0x30f   : > { %v2651_v48 = vpop.f32.mrb[8].mxu1 }
 0x310   : > { %v3858_v29 = vadd.f32 %v2651_v48, %v3807_v6  ;;  %1638 = vadd.xlane.f32.xlu1 %v1601_v12  ;;  %v1405_v53 = vpop.f32.mrb[9].mxu1 }
 0x311   : > { %v2652_v24 = vpop.f32.mrb[10].mxu1  ;;  %v3865_v11 = vadd.f32 %v1405_v53, %v3807_v6 }
 0x312   : > { %v3861_v27 = vadd.f32 %v2652_v24, %v3807_v6  ;;  %1520 = vadd.xlane.f32.xlu0 %v3858_v29  ;;  %v1408_v41 = vpop.f32.mrb[11].mxu1  ;;  %v1606_v28 = vmul.f32 %v3858_v29, %v3858_v29 }
 0x313   : > { %v3869_v49 = vadd.f32 %v1408_v41, %v3807_v6  ;;  %v1604_v56 = vmul.f32 %v3865_v11, %v3865_v11 }
 0x314   : > { %1522 = vadd.xlane.f32.xlu1 %v3861_v27  ;;  %v1607_v45 = vmul.f32 %v3861_v27, %v3861_v27 }
 0x315   : > { %v1605_v10 = vmul.f32 %v3869_v49, %v3869_v49 }
 0x316   : > { %1516 = vadd.xlane.f32.xlu0 %v3865_v11 }
 0x318   : > { %1518 = vadd.xlane.f32.xlu1 %v3869_v49 }
 0x31a   : > { %1648 = vadd.xlane.f32.xlu0 %v1606_v28 }
 0x31c   : > { %1650 = vadd.xlane.f32.xlu1 %v1607_v45 }
 0x31e   : > { %1644 = vadd.xlane.f32.xlu0 %v1604_v56 }
 0x31f   : > { %v2655_v9 = vpop.f32.mrb[12].mxu1 }
 0x320   : > { %v3882_v50 = vadd.f32 %v2655_v9, %v3807_v6  ;;  %1646 = vadd.xlane.f32.xlu1 %v1605_v10  ;;  %v1421_v15 = vpop.f32.mrb[13].mxu1 }
 0x321   : > { %v2656_v61 = vpop.f32.mrb[14].mxu1  ;;  %v3889_v55 = vadd.f32 %v1421_v15, %v3807_v6 }
 0x322   : > { %v3885_v31 = vadd.f32 %v2656_v61, %v3807_v6  ;;  %1528 = vadd.xlane.f32.xlu0 %v3882_v50  ;;  %v1424_v19 = vpop.f32.mrb[15].mxu1  ;;  %v1610_v38 = vmul.f32 %v3882_v50, %v3882_v50 }
 0x323   : > { %v3893_v3 = vadd.f32 %v1424_v19, %v3807_v6  ;;  %v1608_v62 = vmul.f32 %v3889_v55, %v3889_v55 }
 0x324   : > { %1530 = vadd.xlane.f32.xlu1 %v3885_v31  ;;  %v1611_v8 = vmul.f32 %v3885_v31, %v3885_v31 }
 0x325   : > { %v1609_v4 = vmul.f32 %v3893_v3, %v3893_v3 }
 0x326   : > { %1524 = vadd.xlane.f32.xlu0 %v3889_v55 }
 0x328   : > { %1526 = vadd.xlane.f32.xlu1 %v3893_v3 }
 0x32a   : > { %1656 = vadd.xlane.f32.xlu0 %v1610_v38 }
 0x32c   : > { %1658 = vadd.xlane.f32.xlu1 %v1611_v8 }
 0x32e   : > { %1652 = vadd.xlane.f32.xlu0 %v1608_v62 }
 0x32f   : > { %v2659_v59 = vpop.f32.mrb[16].mxu1 }
 0x330   : > { %v3906_v7 = vadd.f32 %v2659_v59, %v3807_v6  ;;  %1654 = vadd.xlane.f32.xlu1 %v1609_v4  ;;  %v1437_v58 = vpop.f32.mrb[17].mxu1 }
 0x331   : > { %v2660_v54 = vpop.f32.mrb[18].mxu1  ;;  %v3913_v16 = vadd.f32 %v1437_v58, %v3807_v6 }
 0x332   : > { %v3909_v1 = vadd.f32 %v2660_v54, %v3807_v6  ;;  %1536 = vadd.xlane.f32.xlu0 %v3906_v7  ;;  %v1440_v2 = vpop.f32.mrb[19].mxu1  ;;  %v1614_v34 = vmul.f32 %v3906_v7, %v3906_v7 }
 0x333   : > { %v3917_v13 = vadd.f32 %v1440_v2, %v3807_v6  ;;  %v1612_v17 = vmul.f32 %v3913_v16, %v3913_v16 }
 0x334   : > { %1538 = vadd.xlane.f32.xlu1 %v3909_v1  ;;  %v1615_v44 = vmul.f32 %v3909_v1, %v3909_v1 }
 0x335   : > { %v1613_v42 = vmul.f32 %v3917_v13, %v3917_v13 }
 0x336   : > { %1532 = vadd.xlane.f32.xlu0 %v3913_v16 }
 0x338   : > { %1534 = vadd.xlane.f32.xlu1 %v3917_v13 }
 0x33a   : > { %1664 = vadd.xlane.f32.xlu0 %v1614_v34 }
 0x33c   : > { %1666 = vadd.xlane.f32.xlu1 %v1615_v44 }
 0x33e   : > { %1660 = vadd.xlane.f32.xlu0 %v1612_v17 }
 0x33f   : > { %v2663_v37 = vpop.f32.mrb[20].mxu1 }
 0x340   : > { %v3930_v35 = vadd.f32 %v2663_v37, %v3807_v6  ;;  %1662 = vadd.xlane.f32.xlu1 %v1613_v42  ;;  %v1453_v23 = vpop.f32.mrb[21].mxu1 }
 0x341   : > { %v2664_v33 = vpop.f32.mrb[22].mxu1  ;;  %v3937_v40 = vadd.f32 %v1453_v23, %v3807_v6 }
 0x342   : > { %v3933_v21 = vadd.f32 %v2664_v33, %v3807_v6  ;;  %1544 = vadd.xlane.f32.xlu0 %v3930_v35  ;;  %v1456_v43 = vpop.f32.mrb[23].mxu1  ;;  %v1618_v32 = vmul.f32 %v3930_v35, %v3930_v35 }
 0x343   : > { %v3941_v52 = vadd.f32 %v1456_v43, %v3807_v6  ;;  %v1616_v39 = vmul.f32 %v3937_v40, %v3937_v40 }
 0x344   : > { %1546 = vadd.xlane.f32.xlu1 %v3933_v21  ;;  %v1619_v0 = vmul.f32 %v3933_v21, %v3933_v21 }
 0x345   : > { %v1617_v26 = vmul.f32 %v3941_v52, %v3941_v52 }
 0x346   : > { %1540 = vadd.xlane.f32.xlu0 %v3937_v40 }
 0x348   : > { %1542 = vadd.xlane.f32.xlu1 %v3941_v52 }
 0x34a   : > { %1672 = vadd.xlane.f32.xlu0 %v1618_v32 }
 0x34c   : > { %1674 = vadd.xlane.f32.xlu1 %v1619_v0 }
 0x34e   : > { %1668 = vadd.xlane.f32.xlu0 %v1616_v39 }
 0x34f   : > { %v2667_v36 = vpop.f32.mrb[24].mxu1 }
 0x350   : > { %v3952_v46 = vadd.f32 %v2667_v36, %v3807_v6  ;;  %v1469_v47 = vpop.f32.mrb[25].mxu1  ;;  %1670 = vadd.xlane.f32.xlu1 %v1617_v26 }
 0x351   : > { %v2668_v51 = vpop.f32.mrb[26].mxu1  ;;  %v3961_v53 = vadd.f32 %v1469_v47, %v3807_v6 }
 0x352   : > { %v3957_v12 = vadd.f32 %v2668_v51, %v3807_v6  ;;  %v1472_v48 = vpop.f32.mrb[27].mxu1  ;;  %1552 = vadd.xlane.f32.xlu0 %v3952_v46  ;;  %v1622_v41 = vmul.f32 %v3952_v46, %v3952_v46 }
 0x353   : > { %v3965_v24 = vadd.f32 %v1472_v48, %v3807_v6  ;;  %v1620_v45 = vmul.f32 %v3961_v53, %v3961_v53 }
 0x354   : > { %1554 = vadd.xlane.f32.xlu1 %v3957_v12  ;;  %v1623_v28 = vmul.f32 %v3957_v12, %v3957_v12 }
 0x355   : > { %v1621_v15 = vmul.f32 %v3965_v24, %v3965_v24 }
 0x356   : > { %1548 = vadd.xlane.f32.xlu0 %v3961_v53 }
 0x358   : > { %1550 = vadd.xlane.f32.xlu1 %v3965_v24 }
 0x35a   : > { %1680 = vadd.xlane.f32.xlu0 %v1622_v41 }
 0x35c   : > { %1682 = vadd.xlane.f32.xlu1 %v1623_v28 }
 0x35e   : > { %v2671_v56 = vpop.f32.mrb[28].mxu1  ;;  %1676 = vadd.xlane.f32.xlu0 %v1620_v45 }
 0x35f   : > { %v1485_v10 = vpop.f32.mrb[29].mxu1  ;;  %v3976_v9 = vadd.f32 %v2671_v56, %v3807_v6 }
 0x360   : > { %v2672_v61 = vpop.f32.mrb[30].mxu1  ;;  %1678 = vadd.xlane.f32.xlu1 %v1621_v15  ;;  %v3985_v8 = vadd.f32 %v1485_v10, %v3807_v6 }
 0x361   : > { %v1488_v19 = vpop.f32.mrb[31].mxu1  ;;  %v3981_v38 = vadd.f32 %v2672_v61, %v3807_v6  ;;  %v1626_v58 = vmul.f32 %v3976_v9, %v3976_v9 }
 0x362   : > { %1560 = vadd.xlane.f32.xlu0 %v3976_v9  ;;  %v3989_v62 = vadd.f32 %v1488_v19, %v3807_v6  ;;  %v1624_v4 = vmul.f32 %v3985_v8, %v3985_v8 }
 0x363   : > { %v1627_v6 = vmul.f32 %v3981_v38, %v3981_v38 }
 0x364   : > { %1562 = vadd.xlane.f32.xlu1 %v3981_v38  ;;  %v1625_v59 = vmul.f32 %v3989_v62, %v3989_v62 }
 0x366   : > { %1556 = vadd.xlane.f32.xlu0 %v3985_v8 }
 0x368   : > { %1558 = vadd.xlane.f32.xlu1 %v3989_v62 }
 0x36a   : > { %1684 = vadd.xlane.f32.xlu0 %v1624_v4 }
 0x36c   : > { %1686 = vadd.xlane.f32.xlu1 %v1625_v59 }
 0x36e   : > { %1688 = vadd.xlane.f32.xlu0 %v1626_v58 }
 0x370   : > { %1690 = vadd.xlane.f32.xlu1 %v1627_v6 }
 0x37f   : > { %v1505_v54 = vpop.xlane.xlu0 %1504 }
 0x380   : > { %v1566_v44 = vmul.f32 0.0078125, %v1505_v54 }
 0x381   : > { %v1507_v2 = vpop.xlane.xlu1 %1506 }
 0x382   : > { %v4001_v42 = vmul.f32 0.0078125, %v1507_v2  ;;  %v1726_v23 = vmul.f32 %v1566_v44, %v1566_v44 }
 0x383   : > { %v1501_v34 = vpop.xlane.xlu0 %1500 }
 0x384   : > { %v4003_v33 = vmul.f32 0.0078125, %v1501_v34  ;;  %v1727_v39 = vmul.f32 %v4001_v42, %v4001_v42 }
 0x385   : > { %v1503_v17 = vpop.xlane.xlu1 %1502 }
 0x386   : > { %v4005_v32 = vmul.f32 0.0078125, %v1503_v17  ;;  %v1724_v51 = vmul.f32 %v4003_v33, %v4003_v33 }
 0x387   : > { %v1633_v37 = vpop.xlane.xlu0 %1632 }
 0x388   : > { %v1694_v43 = vmul.f32 0.0078125, %v1633_v37  ;;  %v1725_v45 = vmul.f32 %v4005_v32, %v4005_v32  ;;  %v1950_v37 = vsub.s32 4, %v3333_v25 }
 0x389   : > { %v1635_v0 = vpop.xlane.xlu1 %1634 }
 0x38a   : > { %v1758_v36 = vsub.f32 %v1694_v43, %v1726_v23  ;;  %v1695_v26 = vmul.f32 0.0078125, %v1635_v0  ;;  %v1986_v0 = vsub.s32 5, %v3333_v25 }
 0x38b   : > { %v1629_v47 = vpop.xlane.xlu0 %1628 }
 0x38c   : > { %v1790_v48 = vmax.f32 %v1758_v36, 0.0  ;;  %v1759_v41 = vsub.f32 %v1695_v26, %v1727_v39  ;;  %v1692_v28 = vmul.f32 0.0078125, %v1629_v47  ;;  %v4020_v26 = vld [vmem:[%s3307_s25] sm:$0xff]  }
 0x38d   : > { %v1631_v56 = vpop.xlane.xlu1 %1630  ;;  %v280_v47 = vunpack.c.l.bf16 %v4020_v26 }
 0x38e   : > { %v1854_v10 = vadd.f32 1e-05, %v1790_v48  ;;  %v1791_v15 = vmax.f32 %v1759_v41, 0.0  ;;  %v1756_v61 = vsub.f32 %v1692_v28, %v1724_v51  ;;  %v1693_v19 = vmul.f32 0.0078125, %v1631_v56 }
 0x38f   : > { %v1513_v6 = vpop.xlane.xlu0 %1512  ;;  %v1822_v51 = vsub.f32 %v3810_v14, %v1566_v44  ;;  %v4025_v48 = vrot.slane %v3804_v5, %v1950_v37 }
 0x390   : > { %2856 = vrsqrt.f32 %v1854_v10  ;;  %v1855_v4 = vadd.f32 1e-05, %v1791_v15  ;;  %v1788_v59 = vmax.f32 %v1756_v61, 0.0  ;;  %v1757_v58 = vsub.f32 %v1693_v19, %v1725_v45  ;;  %v2922_v45 = vld [vmem:[%s3307_s25 + $0x8] sm:$0xff]  }
 0x391   : > { %v1515_v34 = vpop.xlane.xlu1 %1514  ;;  %v4014_v43 = vmul.f32 0.0078125, %v1513_v6  ;;  %v282_v56 = vunpack.c.l.bf16 %v2922_v45  ;;  %v1823_v61 = vsub.f32 %v3813_v30, %v4001_v42  ;;  %v4035_v19 = vrot.slane %v3804_v5, %v1986_v0 }
 0x392   : > { %2858 = vrsqrt.f32 %v1855_v4  ;;  %v1852_v54 = vadd.f32 1e-05, %v1788_v59  ;;  %v1789_v2 = vmax.f32 %v1757_v58, 0.0  ;;  %v4017_v36 = vmul.f32 0.0078125, %v1515_v34 }
 0x393   : > { %v1509_v23 = vpop.xlane.xlu0 %1508  ;;  %v1730_v10 = vmul.f32 %v4014_v43, %v4014_v43  ;;  %v283_v58 = vunpack.c.h.bf16 %v2922_v45  ;;  %v1820_v34 = vsub.f32 %v3817_v22, %v4003_v33  ;;  %v1821_v30 = vsub.f32 %v3821_v18, %v4005_v32 }
 0x394   : > { %2860 = vrsqrt.f32 %v1852_v54  ;;  %v1853_v17 = vadd.f32 1e-05, %v1789_v2  ;;  %v4030_v25 = vmul.f32 0.0078125, %v1509_v23  ;;  %v1731_v6 = vmul.f32 %v4017_v36, %v4017_v36 }
 0x395   : > { %v1511_v39 = vpop.xlane.xlu1 %1510 }
 0x396   : > { %2862 = vrsqrt.f32 %v1853_v17  ;;  %v4037_v44 = vmul.f32 0.0078125, %v1511_v39  ;;  %v1728_v23 = vmul.f32 %v4030_v25, %v4030_v25 }
 0x397   : > { %v1641_v41 = vpop.xlane.xlu0 %1640 }
 0x398   : > { %v1698_v15 = vmul.f32 0.0078125, %v1641_v41  ;;  %v1729_v22 = vmul.f32 %v4037_v44, %v4037_v44 }
 0x399   : > { %v1643_v4 = vpop.xlane.xlu1 %1642 }
 0x39a   : > { %v2857_v28 = vpop.eup %2856  ;;  %v1762_v54 = vsub.f32 %v1698_v15, %v1730_v10  ;;  %v1699_v2 = vmul.f32 0.0078125, %v1643_v4 }
 0x39b   : > { %v1918_v14 = vmul.f32 %v2857_v28, %v1822_v51  ;;  %v1637_v17 = vpop.xlane.xlu0 %1636 }
 0x39c   : > { %v2859_v59 = vpop.eup %2858  ;;  %v1794_v0 = vmax.f32 %v1762_v54, 0.0  ;;  %v1763_v39 = vsub.f32 %v1699_v2, %v1731_v6  ;;  %v1696_v51 = vmul.f32 0.0078125, %v1637_v17 }
 0x39d   : > { %v1954_v5 = vmul.f32 %v4025_v48, %v1918_v14  ;;  %v1919_v42 = vmul.f32 %v2859_v59, %v1823_v61  ;;  %v1639_v18 = vpop.xlane.xlu1 %1638  ;;  %v281_v14 = vunpack.c.h.bf16 %v4020_v26 }
 0x39e   : > { %v2861_v37 = vpop.eup %2860  ;;  %v1858_v32 = vadd.f32 1e-05, %v1794_v0  ;;  %v1795_v10 = vmax.f32 %v1763_v39, 0.0  ;;  %v1760_v15 = vsub.f32 %v1696_v51, %v1728_v23  ;;  %v1697_v61 = vmul.f32 0.0078125, %v1639_v18 }
 0x39f   : > { %v1990_v41 = vadd.f32 %v4035_v19, %v1954_v5  ;;  %v1955_v28 = vmul.f32 %v4025_v48, %v1919_v42  ;;  %v1916_v45 = vmul.f32 %v2861_v37, %v1820_v34  ;;  %v1521_v54 = vpop.xlane.xlu0 %1520 }
 0x3a0   : > { %v2863_v33 = vpop.eup %2862  ;;  %2864 = vrsqrt.f32 %v1858_v32  ;;  %v1859_v2 = vadd.f32 1e-05, %v1795_v10  ;;  %v1792_v34 = vmax.f32 %v1760_v15, 0.0  ;;  %v1761_v5 = vsub.f32 %v1697_v61, %v1729_v22 }
 0x3a1   : > { %v1991_v4 = vadd.f32 %v4035_v19, %v1955_v28  ;;  %v1952_v59 = vmul.f32 %v4025_v48, %v1916_v45  ;;  %v1917_v6 = vmul.f32 %v2863_v33, %v1821_v30  ;;  %v2022_v42 = vadd.f32 %v1990_v41, %v282_v56  ;;  %v1523_v0 = vpop.xlane.xlu1 %1522 }
 0x3a2   : > { %2866 = vrsqrt.f32 %v1859_v2  ;;  %v1856_v39 = vadd.f32 1e-05, %v1792_v34  ;;  %v1793_v51 = vmax.f32 %v1761_v5, 0.0  ;;  %v4058_v33 = vmul.f32 0.0078125, %v1521_v54  ;;  %v2923_v34 = vld [vmem:[%s3307_s25 + $0x18] sm:$0xff]  }
 0x3a3   : > { %v2023_v17 = vadd.f32 %v1991_v4, %v283_v58  ;;  %v1988_v37 = vadd.f32 %v4035_v19, %v1952_v59  ;;  %v1953_v23 = vmul.f32 %v4025_v48, %v1917_v6  ;;  %v1517_v30 = vpop.xlane.xlu0 %1516  ;;  %v4067_v22 = vmul.f32 0.0078125, %v1523_v0 }
 0x3a4   : > { %2868 = vrsqrt.f32 %v1856_v39  ;;  %v1857_v18 = vadd.f32 1e-05, %v1793_v51  ;;  %v1734_v15 = vmul.f32 %v4058_v33, %v4058_v33  ;;  %v4071_v61 = vmul.f32 0.0078125, %v1517_v30 }
 0x3a5   : > { %v2442_v28 = vpack.c.bf16 %v2023_v17, %v2022_v42  ;;  %v1989_v45 = vadd.f32 %v4035_v19, %v1953_v23  ;;  %v2020_v56 = vadd.f32 %v1988_v37, %v280_v47  ;;  %v1519_v41 = vpop.xlane.xlu1 %1518  ;;  %v1826_v59 = vsub.f32 %v3834_v57, %v4014_v43 }
 0x3a6   : > { %2870 = vrsqrt.f32 %v1857_v18  ;;  %v4076_v26 = vmul.f32 0.0078125, %v1519_v41  ;;  %v1735_v6 = vmul.f32 %v4067_v22, %v4067_v22  ;;  %v286_v5 = vunpack.c.l.bf16 %v2923_v34 }
 0x3a7   : > { %2514 = vst [vmem:[%s4062_s30 + $0x8] sm:$0xff] %v2442_v28   ;;  %v2021_v58 = vadd.f32 %v1989_v45, %v281_v14  ;;  %v1649_v10 = vpop.xlane.xlu0 %1648  ;;  %v287_v42 = vunpack.c.h.bf16 %v2923_v34  ;;  %v1827_v17 = vsub.f32 %v3837_v63, %v4017_v36  ;;  %v1732_v57 = vmul.f32 %v4071_v61, %v4071_v61 }
 0x3a8   : > { %v1702_v4 = vmul.f32 0.0078125, %v1649_v10  ;;  %v1824_v28 = vsub.f32 %v3841_v60, %v4030_v25  ;;  %v1733_v18 = vmul.f32 %v4076_v26, %v4076_v26  ;;  %v1825_v10 = vsub.f32 %v3845_v20, %v4037_v44 }
 0x3a9   : > { %v2437_v32 = vpack.c.bf16 %v2021_v58, %v2020_v56  ;;  %v1651_v47 = vpop.xlane.xlu1 %1650 }
 0x3aa   : > { %v2865_v14 = vpop.eup %2864  ;;  %v1766_v54 = vsub.f32 %v1702_v4, %v1734_v15  ;;  %v1703_v2 = vmul.f32 0.0078125, %v1651_v47 }
 0x3ab   : > { %2438 = vst [vmem:[%s4062_s30] sm:$0xff] %v2437_v32   ;;  %v1922_v37 = vmul.f32 %v2865_v14, %v1826_v59  ;;  %v1645_v23 = vpop.xlane.xlu0 %1644 }
 0x3ac   : > { %v2867_v0 = vpop.eup %2866  ;;  %v1798_v43 = vmax.f32 %v1766_v54, 0.0  ;;  %v1767_v39 = vsub.f32 %v1703_v2, %v1735_v6  ;;  %v1700_v51 = vmul.f32 0.0078125, %v1645_v23  ;;  %v2924_v54 = vld [vmem:[%s3307_s25 + $0x10] sm:$0xff]  }
 0x3ad   : > { %v1958_v45 = vmul.f32 %v4025_v48, %v1922_v37  ;;  %v1923_v30 = vmul.f32 %v2867_v0, %v1827_v17  ;;  %v1647_v56 = vpop.xlane.xlu1 %1646  ;;  %v284_v2 = vunpack.c.l.bf16 %v2924_v54  ;;  %v285_v20 = vunpack.c.h.bf16 %v2924_v54 }
 0x3ae   : > { %v2869_v63 = vpop.eup %2868  ;;  %v1862_v36 = vadd.f32 1e-05, %v1798_v43  ;;  %v1799_v58 = vmax.f32 %v1767_v39, 0.0  ;;  %v1764_v41 = vsub.f32 %v1700_v51, %v1732_v57  ;;  %v1701_v32 = vmul.f32 0.0078125, %v1647_v56 }
 0x3af   : > { %v1994_v15 = vadd.f32 %v4035_v19, %v1958_v45  ;;  %v1959_v60 = vmul.f32 %v4025_v48, %v1923_v30  ;;  %v1920_v25 = vmul.f32 %v2869_v63, %v1824_v28  ;;  %v1529_v4 = vpop.xlane.xlu0 %1528 }
 0x3b0   : > { %v2871_v59 = vpop.eup %2870  ;;  %2872 = vrsqrt.f32 %v1862_v36  ;;  %v1863_v47 = vadd.f32 1e-05, %v1799_v58  ;;  %v1796_v14 = vmax.f32 %v1764_v41, 0.0  ;;  %v1765_v6 = vsub.f32 %v1701_v32, %v1733_v18 }
 0x3b1   : > { %v1995_v34 = vadd.f32 %v4035_v19, %v1959_v60  ;;  %v1956_v17 = vmul.f32 %v4025_v48, %v1920_v25  ;;  %v1921_v37 = vmul.f32 %v2871_v59, %v1825_v10  ;;  %v1531_v23 = vpop.xlane.xlu1 %1530  ;;  %v2026_v57 = vadd.f32 %v1994_v15, %v286_v5  ;;  %v2925_v59 = vld [vmem:[%s3307_s25 + $0x28] sm:$0xff]  }
 0x3b2   : > { %2874 = vrsqrt.f32 %v1863_v47  ;;  %v1860_v44 = vadd.f32 1e-05, %v1796_v14  ;;  %v1797_v0 = vmax.f32 %v1765_v6, 0.0  ;;  %v4100_v56 = vmul.f32 0.0078125, %v1529_v4 }
 0x3b3   : > { %v2027_v43 = vadd.f32 %v1995_v34, %v287_v42  ;;  %v1992_v39 = vadd.f32 %v4035_v19, %v1956_v17  ;;  %v1957_v51 = vmul.f32 %v4025_v48, %v1921_v37  ;;  %v1525_v28 = vpop.xlane.xlu0 %1524  ;;  %v4102_v36 = vmul.f32 0.0078125, %v1531_v23 }
 0x3b4   : > { %2876 = vrsqrt.f32 %v1860_v44  ;;  %v1861_v45 = vadd.f32 1e-05, %v1797_v0  ;;  %v4105_v41 = vmul.f32 0.0078125, %v1525_v28  ;;  %v1830_v10 = vsub.f32 %v3858_v29, %v4058_v33 }
 0x3b5   : > { %v2452_v30 = vpack.c.bf16 %v2027_v43, %v2026_v57  ;;  %v1993_v18 = vadd.f32 %v4035_v19, %v1957_v51  ;;  %v1527_v63 = vpop.xlane.xlu1 %1526  ;;  %v2024_v5 = vadd.f32 %v1992_v39, %v284_v2  ;;  %v1738_v15 = vmul.f32 %v4100_v56, %v4100_v56 }
 0x3b6   : > { %2878 = vrsqrt.f32 %v1861_v45  ;;  %v290_v47 = vunpack.c.l.bf16 %v2925_v59  ;;  %v1739_v14 = vmul.f32 %v4102_v36, %v4102_v36  ;;  %v4114_v6 = vmul.f32 0.0078125, %v1527_v63 }
 0x3b7   : > { %2516 = vst [vmem:[%s4062_s30 + $0x18] sm:$0xff] %v2452_v30   ;;  %v2025_v42 = vadd.f32 %v1993_v18, %v285_v20  ;;  %v1657_v58 = vpop.xlane.xlu0 %1656  ;;  %v291_v2 = vunpack.c.h.bf16 %v2925_v59  ;;  %v1831_v34 = vsub.f32 %v3861_v27, %v4067_v22  ;;  %v1828_v23 = vsub.f32 %v3865_v11, %v4071_v61 }
 0x3b8   : > { %v1706_v60 = vmul.f32 0.0078125, %v1657_v58  ;;  %v1736_v20 = vmul.f32 %v4105_v41, %v4105_v41  ;;  %v1829_v57 = vsub.f32 %v3869_v49, %v4076_v26  ;;  %v1737_v28 = vmul.f32 %v4114_v6, %v4114_v6 }
 0x3b9   : > { %v2447_v32 = vpack.c.bf16 %v2025_v42, %v2024_v5  ;;  %v1659_v25 = vpop.xlane.xlu1 %1658  ;;  %v2926_v42 = vld [vmem:[%s3307_s25 + $0x20] sm:$0xff]  }
 0x3ba   : > { %v2873_v4 = vpop.eup %2872  ;;  %v1707_v54 = vmul.f32 0.0078125, %v1659_v25  ;;  %v1770_v33 = vsub.f32 %v1706_v60, %v1738_v15  ;;  %v288_v58 = vunpack.c.l.bf16 %v2926_v42  ;;  %v289_v60 = vunpack.c.h.bf16 %v2926_v42 }
 0x3bb   : > { %2515 = vst [vmem:[%s4062_s30 + $0x10] sm:$0xff] %v2447_v32   ;;  %v1926_v29 = vmul.f32 %v2873_v4, %v1830_v10  ;;  %v1653_v17 = vpop.xlane.xlu0 %1652 }
 0x3bc   : > { %v2875_v37 = vpop.eup %2874  ;;  %v1771_v44 = vsub.f32 %v1707_v54, %v1739_v14  ;;  %v1704_v0 = vmul.f32 0.0078125, %v1653_v17  ;;  %v1802_v27 = vmax.f32 %v1770_v33, 0.0 }
 0x3bd   : > { %v1962_v43 = vmul.f32 %v4025_v48, %v1926_v29  ;;  %v1927_v39 = vmul.f32 %v2875_v37, %v1831_v34  ;;  %v1655_v22 = vpop.xlane.xlu1 %1654 }
 0x3be   : > { %v2877_v51 = vpop.eup %2876  ;;  %v1803_v45 = vmax.f32 %v1771_v44, 0.0  ;;  %v1768_v11 = vsub.f32 %v1704_v0, %v1736_v20  ;;  %v1705_v61 = vmul.f32 0.0078125, %v1655_v22  ;;  %v1866_v5 = vadd.f32 1e-05, %v1802_v27 }
 0x3bf   : > { %v1998_v30 = vadd.f32 %v4035_v19, %v1962_v43  ;;  %v1963_v18 = vmul.f32 %v4025_v48, %v1927_v39  ;;  %v1924_v63 = vmul.f32 %v2877_v51, %v1828_v23  ;;  %v1537_v49 = vpop.xlane.xlu0 %1536 }
 0x3c0   : > { %v2879_v26 = vpop.eup %2878  ;;  %v1867_v32 = vadd.f32 1e-05, %v1803_v45  ;;  %v1800_v10 = vmax.f32 %v1768_v11, 0.0  ;;  %v1769_v15 = vsub.f32 %v1705_v61, %v1737_v28  ;;  %2880 = vrsqrt.f32 %v1866_v5 }
 0x3c1   : > { %v1999_v25 = vadd.f32 %v4035_v19, %v1963_v18  ;;  %v1960_v4 = vmul.f32 %v4025_v48, %v1924_v63  ;;  %v1925_v59 = vmul.f32 %v2879_v26, %v1829_v57  ;;  %v1539_v14 = vpop.xlane.xlu1 %1538  ;;  %v2030_v54 = vadd.f32 %v1998_v30, %v290_v47  ;;  %v2927_v63 = vld [vmem:[%s3307_s25 + $0x38] sm:$0xff]  }
 0x3c2   : > { %v1864_v34 = vadd.f32 1e-05, %v1800_v10  ;;  %v1801_v29 = vmax.f32 %v1769_v15, 0.0  ;;  %2882 = vrsqrt.f32 %v1867_v32  ;;  %v4135_v44 = vmul.f32 0.0078125, %v1537_v49 }
 0x3c3   : > { %v2031_v33 = vadd.f32 %v1999_v25, %v291_v2  ;;  %v1996_v17 = vadd.f32 %v4035_v19, %v1960_v4  ;;  %v1961_v37 = vmul.f32 %v4025_v48, %v1925_v59  ;;  %v1533_v23 = vpop.xlane.xlu0 %1532  ;;  %v4138_v43 = vmul.f32 0.0078125, %v1539_v14 }
 0x3c4   : > { %2884 = vrsqrt.f32 %v1864_v34  ;;  %v1865_v20 = vadd.f32 1e-05, %v1801_v29  ;;  %v1742_v22 = vmul.f32 %v4135_v44, %v4135_v44  ;;  %v4143_v51 = vmul.f32 0.0078125, %v1533_v23 }
 0x3c5   : > { %v2462_v0 = vpack.c.bf16 %v2031_v33, %v2030_v54  ;;  %v1997_v57 = vadd.f32 %v4035_v19, %v1961_v37  ;;  %v1535_v47 = vpop.xlane.xlu1 %1534  ;;  %v2028_v2 = vadd.f32 %v1996_v17, %v288_v58  ;;  %v1743_v61 = vmul.f32 %v4138_v43, %v4138_v43 }
 0x3c6   : > { %2886 = vrsqrt.f32 %v1865_v20  ;;  %v294_v5 = vunpack.c.l.bf16 %v2927_v63  ;;  %v1834_v49 = vsub.f32 %v3882_v50, %v4100_v56  ;;  %v1835_v26 = vsub.f32 %v3885_v31, %v4102_v36 }
 0x3c7   : > { %2518 = vst [vmem:[%s4062_s30 + $0x28] sm:$0xff] %v2462_v0   ;;  %v2029_v39 = vadd.f32 %v1997_v57, %v289_v60  ;;  %v1665_v27 = vpop.xlane.xlu0 %1664  ;;  %v4153_v42 = vmul.f32 0.0078125, %v1535_v47  ;;  %v1740_v10 = vmul.f32 %v4143_v51, %v4143_v51  ;;  %v295_v59 = vunpack.c.h.bf16 %v2927_v63 }
 0x3c8   : > { %v1710_v28 = vmul.f32 0.0078125, %v1665_v27  ;;  %v1832_v14 = vsub.f32 %v3889_v55, %v4105_v41  ;;  %v1833_v50 = vsub.f32 %v3893_v3, %v4114_v6 }
 0x3c9   : > { %v2457_v45 = vpack.c.bf16 %v2029_v39, %v2028_v2  ;;  %v1667_v11 = vpop.xlane.xlu1 %1666  ;;  %v1741_v23 = vmul.f32 %v4153_v42, %v4153_v42 }
 0x3ca   : > { %v1774_v30 = vsub.f32 %v1710_v28, %v1742_v22  ;;  %v1711_v18 = vmul.f32 0.0078125, %v1667_v11  ;;  %v2881_v32 = vpop.eup %2880  ;;  %v2928_v22 = vld [vmem:[%s3307_s25 + $0x30] sm:$0xff]  }
 0x3cb   : > { %2517 = vst [vmem:[%s4062_s30 + $0x20] sm:$0xff] %v2457_v45   ;;  %v1661_v58 = vpop.xlane.xlu0 %1660  ;;  %v1930_v56 = vmul.f32 %v2881_v32, %v1834_v49  ;;  %v292_v28 = vunpack.c.l.bf16 %v2928_v22 }
 0x3cc   : > { %v1806_v15 = vmax.f32 %v1774_v30, 0.0  ;;  %v1775_v60 = vsub.f32 %v1711_v18, %v1743_v61  ;;  %v1708_v25 = vmul.f32 0.0078125, %v1661_v58  ;;  %v2883_v4 = vpop.eup %2882  ;;  %v293_v61 = vunpack.c.h.bf16 %v2928_v22 }
 0x3cd   : > { %v1663_v31 = vpop.xlane.xlu1 %1662  ;;  %v1931_v54 = vmul.f32 %v2883_v4, %v1835_v26  ;;  %v1966_v17 = vmul.f32 %v4025_v48, %v1930_v56 }
 0x3ce   : > { %v2885_v36 = vpop.eup %2884  ;;  %v1870_v34 = vadd.f32 1e-05, %v1806_v15  ;;  %v1807_v29 = vmax.f32 %v1775_v60, 0.0  ;;  %v1772_v33 = vsub.f32 %v1708_v25, %v1740_v10  ;;  %v1709_v20 = vmul.f32 0.0078125, %v1663_v31 }
 0x3cf   : > { %v1928_v37 = vmul.f32 %v2885_v36, %v1832_v14  ;;  %v1545_v0 = vpop.xlane.xlu0 %1544  ;;  %v1967_v41 = vmul.f32 %v4025_v48, %v1931_v54  ;;  %v2002_v57 = vadd.f32 %v4035_v19, %v1966_v17 }
 0x3d0   : > { %v2887_v55 = vpop.eup %2886  ;;  %2888 = vrsqrt.f32 %v1870_v34  ;;  %v1871_v3 = vadd.f32 1e-05, %v1807_v29  ;;  %v1804_v6 = vmax.f32 %v1772_v33, 0.0  ;;  %v1773_v39 = vsub.f32 %v1709_v20, %v1741_v23  ;;  %v2929_v23 = vld [vmem:[%s3307_s25 + $0x48] sm:$0xff]  }
 0x3d1   : > { %v1964_v47 = vmul.f32 %v4025_v48, %v1928_v37  ;;  %v1929_v2 = vmul.f32 %v2887_v55, %v1833_v50  ;;  %v1547_v27 = vpop.xlane.xlu1 %1546  ;;  %v2003_v45 = vadd.f32 %v4035_v19, %v1967_v41  ;;  %v2034_v26 = vadd.f32 %v2002_v57, %v294_v5 }
 0x3d2   : > { %2890 = vrsqrt.f32 %v1871_v3  ;;  %v1868_v11 = vadd.f32 1e-05, %v1804_v6  ;;  %v1805_v63 = vmax.f32 %v1773_v39, 0.0  ;;  %v4172_v15 = vmul.f32 0.0078125, %v1545_v0 }
 0x3d3   : > { %v2000_v30 = vadd.f32 %v4035_v19, %v1964_v47  ;;  %v1965_v18 = vmul.f32 %v4025_v48, %v1929_v2  ;;  %v1541_v49 = vpop.xlane.xlu0 %1540  ;;  %v2035_v58 = vadd.f32 %v2003_v45, %v295_v59  ;;  %v4174_v4 = vmul.f32 0.0078125, %v1547_v27 }
 0x3d4   : > { %2892 = vrsqrt.f32 %v1868_v11  ;;  %v1869_v10 = vadd.f32 1e-05, %v1805_v63  ;;  %v4177_v31 = vmul.f32 0.0078125, %v1541_v49  ;;  %v1838_v59 = vsub.f32 %v3906_v7, %v4135_v44 }
 0x3d5   : > { %v2001_v32 = vadd.f32 %v4035_v19, %v1965_v18  ;;  %v1543_v60 = vpop.xlane.xlu1 %1542  ;;  %v2472_v25 = vpack.c.bf16 %v2035_v58, %v2034_v26  ;;  %v2032_v14 = vadd.f32 %v2000_v30, %v292_v28  ;;  %v1746_v36 = vmul.f32 %v4172_v15, %v4172_v15 }
 0x3d6   : > { %2894 = vrsqrt.f32 %v1869_v10  ;;  %v1747_v33 = vmul.f32 %v4174_v4, %v4174_v4  ;;  %v4185_v17 = vmul.f32 0.0078125, %v1543_v60  ;;  %v298_v20 = vunpack.c.l.bf16 %v2929_v23  ;;  %v2930_v60 = vld [vmem:[%s3307_s25 + $0x40] sm:$0xff]  }
 0x3d7   : > { %v2033_v50 = vadd.f32 %v2001_v32, %v293_v61  ;;  %v1673_v56 = vpop.xlane.xlu0 %1672  ;;  %2520 = vst [vmem:[%s4062_s30 + $0x38] sm:$0xff] %v2472_v25   ;;  %v1839_v0 = vsub.f32 %v3909_v1, %v4138_v43  ;;  %v299_v3 = vunpack.c.h.bf16 %v2929_v23  ;;  %v1744_v6 = vmul.f32 %v4177_v31, %v4177_v31 }
 0x3d8   : > { %v1714_v54 = vmul.f32 0.0078125, %v1673_v56  ;;  %v1836_v2 = vsub.f32 %v3913_v16, %v4143_v51  ;;  %v1745_v43 = vmul.f32 %v4185_v17, %v4185_v17  ;;  %v1837_v51 = vsub.f32 %v3917_v13, %v4153_v42 }
 0x3d9   : > { %v2467_v5 = vpack.c.bf16 %v2033_v50, %v2032_v14  ;;  %v1675_v34 = vpop.xlane.xlu1 %1674  ;;  %v296_v25 = vunpack.c.l.bf16 %v2930_v60 }
 0x3da   : > { %v2889_v29 = vpop.eup %2888  ;;  %v1715_v37 = vmul.f32 0.0078125, %v1675_v34  ;;  %v1778_v7 = vsub.f32 %v1714_v54, %v1746_v36  ;;  %v297_v54 = vunpack.c.h.bf16 %v2930_v60  ;;  %v1841_v60 = vsub.f32 %v3941_v52, %v4185_v17 }
 0x3db   : > { %2519 = vst [vmem:[%s4062_s30 + $0x30] sm:$0xff] %v2467_v5   ;;  %v1934_v55 = vmul.f32 %v2889_v29, %v1838_v59  ;;  %v1669_v44 = vpop.xlane.xlu0 %1668 }
 0x3dc   : > { %v2891_v41 = vpop.eup %2890  ;;  %v1779_v57 = vsub.f32 %v1715_v37, %v1747_v33  ;;  %v1712_v47 = vmul.f32 0.0078125, %v1669_v44  ;;  %v1810_v22 = vmax.f32 %v1778_v7, 0.0 }
 0x3dd   : > { %v1970_v39 = vmul.f32 %v4025_v48, %v1934_v55  ;;  %v1935_v27 = vmul.f32 %v2891_v41, %v1839_v0  ;;  %v1671_v28 = vpop.xlane.xlu1 %1670 }
 0x3de   : > { %v2893_v1 = vpop.eup %2892  ;;  %v1811_v45 = vmax.f32 %v1779_v57, 0.0  ;;  %v1776_v11 = vsub.f32 %v1712_v47, %v1744_v6  ;;  %v1713_v61 = vmul.f32 0.0078125, %v1671_v28  ;;  %v1874_v49 = vadd.f32 1e-05, %v1810_v22 }
 0x3df   : > { %v2006_v30 = vadd.f32 %v4035_v19, %v1970_v39  ;;  %v1971_v18 = vmul.f32 %v4025_v48, %v1935_v27  ;;  %v1932_v63 = vmul.f32 %v2893_v1, %v1836_v2  ;;  %v1553_v16 = vpop.xlane.xlu0 %1552  ;;  %v4218_v2 = vld [vmem:[%s3307_s25 + $0x50] sm:$0xff]   ;;  %v1842_v27 = vsub.f32 %v3930_v35, %v4172_v15 }
 0x3e0   : > { %v1875_v26 = vadd.f32 1e-05, %v1811_v45  ;;  %v1808_v58 = vmax.f32 %v1776_v11, 0.0  ;;  %v1777_v32 = vsub.f32 %v1713_v61, %v1745_v43  ;;  %v2895_v10 = vpop.eup %2894  ;;  %2896 = vrsqrt.f32 %v1874_v49  ;;  %v2932_v61 = vld [vmem:[%s3307_s25 + $0x58] sm:$0xff]  }
 0x3e1   : > { %v2007_v14 = vadd.f32 %v4035_v19, %v1971_v18  ;;  %v1968_v50 = vmul.f32 %v4025_v48, %v1932_v63  ;;  %v1555_v56 = vpop.xlane.xlu1 %1554  ;;  %v1933_v5 = vmul.f32 %v2895_v10, %v1837_v51  ;;  %v2038_v34 = vadd.f32 %v2006_v30, %v298_v20 }
 0x3e2   : > { %2898 = vrsqrt.f32 %v1875_v26  ;;  %v1872_v59 = vadd.f32 1e-05, %v1808_v58  ;;  %v1809_v36 = vmax.f32 %v1777_v32, 0.0  ;;  %v4205_v42 = vmul.f32 0.0078125, %v1553_v16 }
 0x3e3   : > { %v2039_v13 = vadd.f32 %v2007_v14, %v299_v3  ;;  %v1549_v29 = vpop.xlane.xlu0 %1548  ;;  %v2004_v33 = vadd.f32 %v4035_v19, %v1968_v50  ;;  %v1969_v37 = vmul.f32 %v4025_v48, %v1933_v5  ;;  %v4210_v44 = vmul.f32 0.0078125, %v1555_v56 }
 0x3e4   : > { %2900 = vrsqrt.f32 %v1872_v59  ;;  %v1873_v23 = vadd.f32 1e-05, %v1809_v36  ;;  %v4213_v20 = vmul.f32 0.0078125, %v1549_v29  ;;  %v1750_v57 = vmul.f32 %v4205_v42, %v4205_v42 }
 0x3e5   : > { %v2482_v0 = vpack.c.bf16 %v2039_v13, %v2038_v34  ;;  %v1551_v55 = vpop.xlane.xlu1 %1550  ;;  %v2005_v7 = vadd.f32 %v4035_v19, %v1969_v37  ;;  %v2036_v3 = vadd.f32 %v2004_v33, %v296_v25  ;;  %v300_v39 = vunpack.c.l.bf16 %v4218_v2 }
 0x3e6   : > { %2902 = vrsqrt.f32 %v1873_v23  ;;  %v1751_v1 = vmul.f32 %v4210_v44, %v4210_v44  ;;  %v302_v30 = vunpack.c.l.bf16 %v2932_v61  ;;  %v1843_v18 = vsub.f32 %v3933_v21, %v4174_v4 }
 0x3e7   : > { %2522 = vst [vmem:[%s4062_s30 + $0x48] sm:$0xff] %v2482_v0   ;;  %v1681_v41 = vpop.xlane.xlu0 %1680  ;;  %v2037_v6 = vadd.f32 %v2005_v7, %v297_v54  ;;  %v1748_v63 = vmul.f32 %v4213_v20, %v4213_v20  ;;  %v4230_v49 = vmul.f32 0.0078125, %v1551_v55  ;;  %v303_v32 = vunpack.c.h.bf16 %v2932_v61 }
 0x3e8   : > { %v1718_v47 = vmul.f32 0.0078125, %v1681_v41  ;;  %v1840_v10 = vsub.f32 %v3937_v40, %v4177_v31  ;;  %v301_v55 = vunpack.c.h.bf16 %v4218_v2 }
 0x3e9   : > { %v1683_v22 = vpop.xlane.xlu1 %1682  ;;  %v2477_v28 = vpack.c.bf16 %v2037_v6, %v2036_v3  ;;  %v1749_v54 = vmul.f32 %v4230_v49, %v4230_v49 }
 0x3ea   : > { %v1782_v43 = vsub.f32 %v1718_v47, %v1750_v57  ;;  %v1719_v45 = vmul.f32 0.0078125, %v1683_v22  ;;  %v2897_v11 = vpop.eup %2896 }
 0x3eb   : > { %v1677_v16 = vpop.xlane.xlu0 %1676  ;;  %2521 = vst [vmem:[%s4062_s30 + $0x40] sm:$0xff] %v2477_v28   ;;  %v1938_v15 = vmul.f32 %v2897_v11, %v1842_v27 }
 0x3ec   : > { %v2899_v35 = vpop.eup %2898  ;;  %v1814_v51 = vmax.f32 %v1782_v43, 0.0  ;;  %v1783_v26 = vsub.f32 %v1719_v45, %v1751_v1  ;;  %v1716_v58 = vmul.f32 0.0078125, %v1677_v16  ;;  %v1846_v16 = vsub.f32 %v3952_v46, %v4205_v42 }
 0x3ed   : > { %v1939_v21 = vmul.f32 %v2899_v35, %v1843_v18  ;;  %v1679_v4 = vpop.xlane.xlu1 %1678  ;;  %v1974_v14 = vmul.f32 %v4025_v48, %v1938_v15 }
 0x3ee   : > { %v2901_v25 = vpop.eup %2900  ;;  %v1878_v50 = vadd.f32 1e-05, %v1814_v51  ;;  %v1815_v56 = vmax.f32 %v1783_v26, 0.0  ;;  %v1780_v5 = vsub.f32 %v1716_v58, %v1748_v63  ;;  %v1717_v34 = vmul.f32 0.0078125, %v1679_v4 }
 0x3ef   : > { %v1975_v59 = vmul.f32 %v4025_v48, %v1939_v21  ;;  %v1936_v36 = vmul.f32 %v2901_v25, %v1840_v10  ;;  %v1561_v13 = vpop.xlane.xlu0 %1560  ;;  %v2010_v31 = vadd.f32 %v4035_v19, %v1974_v14  ;;  %v2933_v10 = vld [vmem:[%s3307_s25 + $0x68] sm:$0xff]   ;;  %v1847_v21 = vsub.f32 %v3957_v12, %v4210_v44 }
 0x3f0   : > { %v2903_v40 = vpop.eup %2902  ;;  %2904 = vrsqrt.f32 %v1878_v50  ;;  %v1879_v52 = vadd.f32 1e-05, %v1815_v56  ;;  %v1812_v17 = vmax.f32 %v1780_v5, 0.0  ;;  %v1781_v23 = vsub.f32 %v1717_v34, %v1749_v54 }
 0x3f1   : > { %v2011_v29 = vadd.f32 %v4035_v19, %v1975_v59  ;;  %v1972_v33 = vmul.f32 %v4025_v48, %v1936_v36  ;;  %v1937_v37 = vmul.f32 %v2903_v40, %v1841_v60  ;;  %v1563_v0 = vpop.xlane.xlu1 %1562  ;;  %v2042_v7 = vadd.f32 %v2010_v31, %v302_v30 }
 0x3f2   : > { %2906 = vrsqrt.f32 %v1879_v52  ;;  %v1876_v41 = vadd.f32 1e-05, %v1812_v17  ;;  %v1813_v47 = vmax.f32 %v1781_v23, 0.0  ;;  %v4253_v18 = vmul.f32 0.0078125, %v1561_v13 }
 0x3f3   : > { %v2043_v3 = vadd.f32 %v2011_v29, %v303_v32  ;;  %v2008_v6 = vadd.f32 %v4035_v19, %v1972_v33  ;;  %v1973_v57 = vmul.f32 %v4025_v48, %v1937_v37  ;;  %v1557_v27 = vpop.xlane.xlu0 %1556  ;;  %v4259_v58 = vmul.f32 0.0078125, %v1563_v0 }
 0x3f4   : > { %2908 = vrsqrt.f32 %v1876_v41  ;;  %v1877_v1 = vadd.f32 1e-05, %v1813_v47  ;;  %v4248_v45 = vmul.f32 0.0078125, %v1557_v27  ;;  %v306_v60 = vunpack.c.l.bf16 %v2933_v10  ;;  %v2934_v47 = vld [vmem:[%s3307_s25 + $0x60] sm:$0xff]  }
 0x3f5   : > { %v2492_v22 = vpack.c.bf16 %v2043_v3, %v2042_v7  ;;  %v2009_v28 = vadd.f32 %v4035_v19, %v1973_v57  ;;  %v1559_v43 = vpop.xlane.xlu1 %1558  ;;  %v2040_v11 = vadd.f32 %v2008_v6, %v300_v39  ;;  %v307_v14 = vunpack.c.h.bf16 %v2933_v10 }
 0x3f6   : > { %v4250_v2 = vmul.f32 0.0078125, %v1559_v43  ;;  %2910 = vrsqrt.f32 %v1877_v1  ;;  %v1752_v35 = vmul.f32 %v4248_v45, %v4248_v45  ;;  %v1754_v50 = vmul.f32 %v4253_v18, %v4253_v18 }
 0x3f7   : > { %2524 = vst [vmem:[%s4062_s30 + $0x58] sm:$0xff] %v2492_v22   ;;  %v2041_v61 = vadd.f32 %v2009_v28, %v301_v55  ;;  %v1685_v30 = vpop.xlane.xlu0 %1684  ;;  %v1844_v59 = vsub.f32 %v3961_v53, %v4213_v20  ;;  %v1755_v12 = vmul.f32 %v4259_v58, %v4259_v58  ;;  %v1845_v53 = vsub.f32 %v3965_v24, %v4230_v49 }
 0x3f8   : > { %v1720_v15 = vmul.f32 0.0078125, %v1685_v30  ;;  %v1753_v39 = vmul.f32 %v4250_v2, %v4250_v2  ;;  %v304_v27 = vunpack.c.l.bf16 %v2934_v47  ;;  %v305_v22 = vunpack.c.h.bf16 %v2934_v47 }
 0x3f9   : > { %v2487_v63 = vpack.c.bf16 %v2041_v61, %v2040_v11  ;;  %v1687_v51 = vpop.xlane.xlu1 %1686 }
 0x3fa   : > { %v2905_v26 = vpop.eup %2904  ;;  %v1721_v32 = vmul.f32 0.0078125, %v1687_v51  ;;  %v1784_v46 = vsub.f32 %v1720_v15, %v1752_v35  ;;  %v1848_v35 = vsub.f32 %v3985_v8, %v4248_v45  ;;  %v1849_v51 = vsub.f32 %v3989_v62, %v4250_v2 }
 0x3fb   : > { %2523 = vst [vmem:[%s4062_s30 + $0x50] sm:$0xff] %v2487_v63   ;;  %v1942_v4 = vmul.f32 %v2905_v26, %v1846_v16  ;;  %v1689_v42 = vpop.xlane.xlu0 %1688  ;;  %v1851_v8 = vsub.f32 %v3981_v38, %v4259_v58 }
 0x3fc   : > { %v2907_v25 = vpop.eup %2906  ;;  %v1785_v56 = vsub.f32 %v1721_v32, %v1753_v39  ;;  %v1722_v5 = vmul.f32 0.0078125, %v1689_v42  ;;  %v1816_v34 = vmax.f32 %v1784_v46, 0.0  ;;  %v1850_v32 = vsub.f32 %v3976_v9, %v4253_v18 }
 0x3fd   : > { %v1978_v36 = vmul.f32 %v4025_v48, %v1942_v4  ;;  %v1943_v54 = vmul.f32 %v2907_v25, %v1847_v21  ;;  %v1691_v13 = vpop.xlane.xlu1 %1690  ;;  %v2935_v21 = vld [vmem:[%s3307_s25 + $0x70] sm:$0xff]  }
 0x3fe   : > { %v2909_v40 = vpop.eup %2908  ;;  %v1817_v44 = vmax.f32 %v1785_v56, 0.0  ;;  %v1786_v31 = vsub.f32 %v1722_v5, %v1754_v50  ;;  %v1723_v52 = vmul.f32 0.0078125, %v1691_v13  ;;  %v1880_v37 = vadd.f32 1e-05, %v1816_v34  ;;  %v2936_v50 = vld [vmem:[%s3307_s25 + $0x78] sm:$0xff]  }
 0x3ff   : > { %v2014_v17 = vadd.f32 %v4035_v19, %v1978_v36  ;;  %v1979_v29 = vmul.f32 %v4025_v48, %v1943_v54  ;;  %v1940_v33 = vmul.f32 %v2909_v40, %v1844_v59  ;;  %v308_v4 = vunpack.c.l.bf16 %v2935_v21 }
 0x400   : > { %v1881_v20 = vadd.f32 1e-05, %v1817_v44  ;;  %v1818_v23 = vmax.f32 %v1786_v31, 0.0  ;;  %v1787_v0 = vsub.f32 %v1723_v52, %v1755_v12  ;;  %v2911_v55 = vpop.eup %2910  ;;  %2912 = vrsqrt.f32 %v1880_v37 }
 0x401   : > { %v2015_v7 = vadd.f32 %v4035_v19, %v1979_v29  ;;  %v1976_v41 = vmul.f32 %v4025_v48, %v1940_v33  ;;  %v1941_v3 = vmul.f32 %v2911_v55, %v1845_v53  ;;  %v2046_v28 = vadd.f32 %v2014_v17, %v306_v60 }
 0x402   : > { %2914 = vrsqrt.f32 %v1881_v20  ;;  %v1882_v6 = vadd.f32 1e-05, %v1818_v23  ;;  %v1819_v57 = vmax.f32 %v1787_v0, 0.0  ;;  %v309_v42 = vunpack.c.h.bf16 %v2935_v21 }
 0x403   : > { %v2047_v1 = vadd.f32 %v2015_v7, %v307_v14  ;;  %v2012_v24 = vadd.f32 %v4035_v19, %v1976_v41  ;;  %v1977_v49 = vmul.f32 %v4025_v48, %v1941_v3  ;;  %v310_v56 = vunpack.c.l.bf16 %v2936_v50 }
 0x404   : > { %2916 = vrsqrt.f32 %v1882_v6  ;;  %v1883_v43 = vadd.f32 1e-05, %v1819_v57  ;;  %v311_v5 = vunpack.c.h.bf16 %v2936_v50 }
 0x405   : > { %v2502_v11 = vpack.c.bf16 %v2047_v1, %v2046_v28  ;;  %v2013_v61 = vadd.f32 %v4035_v19, %v1977_v49  ;;  %v2044_v30 = vadd.f32 %v2012_v24, %v304_v27 }
 0x406   : > { %2918 = vrsqrt.f32 %v1883_v43 }
 0x407   : > { %2526 = vst [vmem:[%s4062_s30 + $0x68] sm:$0xff] %v2502_v11   ;;  %v2045_v63 = vadd.f32 %v2013_v61, %v305_v22 }
 0x409   : > { %v2497_v16 = vpack.c.bf16 %v2045_v63, %v2044_v30 }
 0x40a   : > { %v2913_v15 = vpop.eup %2912 }
 0x40b   : > { %2525 = vst [vmem:[%s4062_s30 + $0x60] sm:$0xff] %v2497_v16   ;;  %v1944_v39 = vmul.f32 %v2913_v15, %v1848_v35 }
 0x40c   : > { %v2915_v26 = vpop.eup %2914 }
 0x40d   : > { %v1945_v10 = vmul.f32 %v2915_v26, %v1849_v51  ;;  %v1980_v46 = vmul.f32 %v4025_v48, %v1944_v39 }
 0x40e   : > { %v2917_v60 = vpop.eup %2916 }
 0x40f   : > { %v1981_v45 = vmul.f32 %v4025_v48, %v1945_v10  ;;  %v1946_v62 = vmul.f32 %v2917_v60, %v1850_v32  ;;  %v2016_v25 = vadd.f32 %v4035_v19, %v1980_v46 }
 0x410   : > { %v2919_v2 = vpop.eup %2918 }
 0x411   : > { %v2017_v9 = vadd.f32 %v4035_v19, %v1981_v45  ;;  %v1982_v18 = vmul.f32 %v4025_v48, %v1946_v62  ;;  %v1947_v14 = vmul.f32 %v2919_v2, %v1851_v8  ;;  %v2048_v38 = vadd.f32 %v2016_v25, %v308_v4 }
 0x413   : > { %v2049_v58 = vadd.f32 %v2017_v9, %v309_v42  ;;  %v2018_v59 = vadd.f32 %v4035_v19, %v1982_v18  ;;  %v1983_v36 = vmul.f32 %v4025_v48, %v1947_v14 }
 0x415   : > { %v2507_v54 = vpack.c.bf16 %v2049_v58, %v2048_v38  ;;  %v2019_v34 = vadd.f32 %v4035_v19, %v1983_v36  ;;  %v2050_v13 = vadd.f32 %v2018_v59, %v310_v56 }
 0x417   : > { %2527 = vst [vmem:[%s4062_s30 + $0x70] sm:$0xff] %v2507_v54   ;;  %v2051_v40 = vadd.f32 %v2019_v34, %v311_v5 }
 0x419   : > { %v2512_v12 = vpack.c.bf16 %v2051_v40, %v2050_v13 }
 0x41b   : > { %2528 = vst [vmem:[%s4062_s30 + $0x78] sm:$0xff] %v2512_v12  }
 0x41c   : > { %3036 = shalt.err (!%p3033_p7)
}
 0x41d   : > { %s3037_s24 = scalar_lea.hbm %s4310_s20, 2048  ;;  %s3041_s23 = scalar_lea.hbm %s4360_s4, 16384 }
 0x41e   : > { %p3038_p9 = scmp.ne.s32.totalorder %s4310_s20, %s3037_s24  ;;  %p3042_p5 = scmp.lt.u32.totalorder %s4310_s20, %s4360_s4 }
 0x41f   : > { %p3043_p10 = scmp.lt.u32.totalorder %s3041_s23, %s3037_s24  ;;  %p3045_p2 = scmp.lt.u32.totalorder %s3037_s24, %s4310_s20 }
 0x420   : > { %p3039_p12 = pnand %p3038_p9, %p3246_p6 }
 0x421   : > { %p3044_p1 = por %p3043_p10, %p3042_p5 }
 0x422   : > { %p3040_p0 = pneg %p3039_p12 }
 0x423   : > { %p3046_p4 = por %p3045_p2, %p3044_p1 }
 0x425   : > { %p3047_p8 = pnand %p3046_p4, %p3040_p0 }
 0x427   : > { %3050 = shalt.err (!%p3047_p8)
}
 0x428   : > { %s3101_s30 = smov 64   ;;  %s3102_s6 = smov 4  }
 0x429   : > { %2683 = dma.vmem_to_hbm [thread:$0]  (%p3246_p6), %s4312_s7, 2048, %s4310_s20, %s2213_s29, %s3101_s30, %s3101_s30, %s3102_s6  }
 0x42a PF: > { %p2705_p11 = scmp.ge.s32.totalorder %s3093_s18, 2  ;;  %s2241_s28 = sand.u32 1, %s3081_s15  }
 0x42b   : > { %p4375_p13 = scmp.ne.s32.totalorder %s4365_s22, 0  ;;  %s2242_s27 = scalar_lea.sflag [#allocation4], %s2241_s28 }
 0x42d   : > { %p2697_p3 = pnand %p2705_p11, %p4375_p13 }
 0x42f   : > { %3076 = dma.done.wait (!%p2697_p3), %s2242_s27, 2048  }
 0x430   : > { %3078 = vsyncadd (!%p2697_p3), %s2242_s27, 4294965248  ;;  %p18_p7 = scmp.ge.s32.totalorder %s3236_s26, 10   ;;  %s4376_s15 = smov %s3085_s16 }
 0x431   : > { %s4377_s16 = smov %s3089_s17  ;;  %s4378_s17 = smov %s3252_s14 }
 0x432   : > { %s4379_s18 = smov %s3236_s26  ;;  %20 = sbr.rel (!%p18_p7) target bundleno = 6 (0x6), region = 89 }
 0x439   :  { %2247 = vsyncpa [#allocation3], 1 }
 0x43a   :  { %2249 = vsyncpa [#allocation3 + $0x1], 1 }
 0x43b   :  { %2250 = vsyncpa [#allocation6], 1 }
 0x43c   :  { %2251 = vsyncpa [#allocation4], 1 }
 0x43d   :  { %2253 = vsyncpa [#allocation4 + $0x1], 1 }

</bundles_post_ra>
